<compile_context>
chip_gen: v7x
topology: tpu7x:2x2x1
jax: 0.10.0
libtpu: 0.0.40
codegen_flags: <defaults>
</compile_context>

<pallas_src>
import functools

import jax
import jax.numpy as jnp
from jax import lax
from jax.experimental import pallas as pl
from jax.experimental.pallas import tpu as pltpu

_LANE = 128
_SUBLANE = 8


def _round_up(x, m):
    return ((x + m - 1) // m) * m


def _cdiv(a, b):
    return -(-a // b)


def _additive_attention_kernel(vlen_ref,          # SMEM prefetch: (B,) int32
                               qp_ref,            # (tq, H)   queries @ W_q
                               kpt_ref,           # (H, tk)   (keys @ W_k)^T
                               v_ref,             # (tk, Dv)  values (native dtype)
                               wv_ref,            # (1, H)    w_v, f32
                               o_ref,             # (tq, dv_pad)
                               m_sc, l_sc, acc_sc,
                               *, k_total, k_padded):
    b = pl.program_id(0)
    kt = pl.program_id(2)
    n_kt = pl.num_programs(2)

    tq, hdim = qp_ref.shape
    tk = kpt_ref.shape[-1]
    vlen = vlen_ref[b]
    k_start = kt * tk

    @pl.when(kt == 0)
    def _init():
        m_sc[...] = jnp.full_like(m_sc, -1e30)
        l_sc[...] = jnp.zeros_like(l_sc)
        acc_sc[...] = jnp.zeros_like(acc_sc)

    # Skip K tiles that are entirely masked (k_start >= valid_len): when
    # vlen > 0 their exp(-1e6 - m) contributions underflow to exactly 0, so
    # skipping matches the reference bit-for-bit.  vlen == 0 keeps the
    # reference's "uniform softmax over -1e6 scores" semantics by processing
    # every tile.
    process = jnp.logical_or(vlen == 0, k_start < vlen)

    @pl.when(process)
    def _tile():
        qp = qp_ref[...]                    # (tq, H)  tanh dtype
        kpt = kpt_ref[...]                  # (H, tk)  tanh dtype
        wv = wv_ref[...]                    # (1, H)   f32

        # Lane-dense H-accumulation: every step is one full (tq, tk) tanh on
        # the EUP; only a few (tq, tk) vregs stay live (no 3-D intermediate).
        # TODO(synk): for very large H, chunk this unrolled loop.
        scores = jnp.zeros((tq, tk), jnp.float32)
        for h in range(hdim):
            feat = jnp.tanh(qp[:, h:h + 1] + kpt[h:h + 1, :])       # (tq, tk)
            scores = scores + wv[:, h:h + 1] * feat.astype(jnp.float32)

        col = k_start + lax.broadcasted_iota(jnp.int32, (tq, tk), 1)
        scores = jnp.where(col < vlen, scores, jnp.float32(-1e6))   # reference fill
        if k_padded != k_total:                                     # K-pad columns
            scores = jnp.where(col < k_total, scores, jnp.float32(-1e9))

        # Online-softmax update (normalisation is an exact divide at finalize).
        m_prev = m_sc[...]
        m_new = jnp.maximum(m_prev, jnp.max(scores, axis=-1, keepdims=True))
        alpha = jnp.exp(m_prev - m_new)
        p = jnp.exp(scores - m_new)
        l_sc[...] = alpha * l_sc[...] + jnp.sum(p, axis=-1, keepdims=True)
        # bf16 MXU matmul, f32 accumulate.
        acc_sc[...] = alpha * acc_sc[...] + jnp.dot(
            p.astype(jnp.bfloat16), v_ref[...].astype(jnp.bfloat16),
            preferred_element_type=jnp.float32)
        m_sc[...] = m_new

    @pl.when(kt == n_kt - 1)
    def _finalize():
        # TODO(synk): dropout is identity in eval mode; training-mode mask not implemented.
        out = acc_sc[...] / l_sc[...]                               # (tq, Dv) f32
        pad = o_ref.shape[-1] - out.shape[-1]
        if pad > 0:   # zero-pad in vregs so the HBM store is one unmasked vst
            out = jnp.concatenate(
                [out, jnp.zeros((out.shape[0], pad), out.dtype)], axis=-1)
        o_ref[...] = out.astype(o_ref.dtype)


def additive_attention(queries, keys, values, valid_lens, w_q, w_k, w_v,
                       *, tanh_dtype=None):
    """Additive attention forward.

    queries (B,Q,Dq), keys (B,K,Dk), values (B,K,Dv), valid_lens (B,) int or None.
    w_q: (Dq,H), w_k: (Dk,H), w_v: (H,1)   (transposed vs PyTorch's (out,in)).
    tanh_dtype: None -> bf16 on v6e/v7x (bf16 EUP/VPU), f32 otherwise.
    """
    B, Q, _ = queries.shape
    _, K, _ = keys.shape
    _, _, Dv = values.shape
    H = w_q.shape[1]

    if tanh_dtype is None:
        kind = jax.devices()[0].device_kind.lower()
        tanh_dtype = jnp.bfloat16 if ("v6" in kind or "v7" in kind) else jnp.float32

    # Hoisted projections: two large XLA matmuls.  Keys go straight into
    # (B, H, K) layout so the kernel's per-h slice is a cheap sublane slice.
    # qp/kp_t are stored in the tanh compute dtype (halves their HBM traffic on
    # the bf16 path); values stay in the caller's dtype with native Dv.
    qp = jnp.einsum('bqd,dh->bqh', queries, w_q).astype(tanh_dtype)   # (B, Q, H)
    kpt = jnp.einsum('bkd,dh->bhk', keys, w_k).astype(tanh_dtype)     # (B, H, K)
    wv = w_v.reshape(1, H).astype(jnp.float32)                        # (1, H)

    if valid_lens is None:
        valid_lens = jnp.full((B,), K, dtype=jnp.int32)
    valid_lens = valid_lens.astype(jnp.int32)
    # TODO(synk): per-query (B, Q) valid_lens (accepted by the PyTorch
    # masked_softmax) is not supported; only per-batch (B,) lengths are handled.

    # --- query tiling: balanced tiles, multiple of 8 sublanes, >= 2 grid steps.
    n_qt = max(1, _cdiv(Q, 128))
    if B * n_qt < 2 and Q > _SUBLANE:
        n_qt = 2                      # keep both v7x TensorCores busy when B == 1
    tq = _round_up(_cdiv(Q, n_qt), _SUBLANE)
    n_qt = _cdiv(Q, tq)
    q_pad = n_qt * tq
    if q_pad != Q:
        qp = jnp.pad(qp, ((0, 0), (0, q_pad - Q), (0, 0)))

    # --- key tiling: a single full-extent tile for small K, otherwise 512-wide
    # tiles accumulated with an online softmax over the last grid axis.
    if K <= 512:
        tk, n_kt, k_pad = K, 1, K
    else:
        tk = 512
        k_pad = _round_up(K, tk)
        n_kt = k_pad // tk
        kpt = jnp.pad(kpt, ((0, 0), (0, 0), (0, k_pad - K)))
        values = jnp.pad(values, ((0, 0), (0, k_pad - K), (0, 0)))

    dv_pad = _round_up(Dv, _LANE)     # lane-dense output store, padded in-kernel
    out_dtype = values.dtype

    kernel = functools.partial(_additive_attention_kernel,
                               k_total=K, k_padded=k_pad)

    out = pl.pallas_call(
        kernel,
        out_shape=jax.ShapeDtypeStruct((B, q_pad, dv_pad), out_dtype),
        grid_spec=pltpu.PrefetchScalarGridSpec(
            num_scalar_prefetch=1,                       # valid_lens -> SMEM
            grid=(B, n_qt, n_kt),
            in_specs=[
                pl.BlockSpec((pl.Squeezed(), tq, H),
                             lambda b, qt, kt, vl: (b, qt, 0)),        # qp
                pl.BlockSpec((pl.Squeezed(), H, tk),
                             lambda b, qt, kt, vl: (b, 0, kt)),        # kp_t
                pl.BlockSpec((pl.Squeezed(), tk, Dv),
                             lambda b, qt, kt, vl: (b, kt, 0)),        # values
                pl.BlockSpec((1, H), lambda b, qt, kt, vl: (0, 0)),    # w_v
            ],
            out_specs=pl.BlockSpec((pl.Squeezed(), tq, dv_pad),
                                   lambda b, qt, kt, vl: (b, qt, 0)),
            scratch_shapes=[
                pltpu.VMEM((tq, 1), jnp.float32),     # running max
                pltpu.VMEM((tq, 1), jnp.float32),     # running denominator
                pltpu.VMEM((tq, Dv), jnp.float32),    # running numerator
            ],
        ),
        compiler_params=pltpu.CompilerParams(
            dimension_semantics=("parallel", "parallel", "arbitrary")),
    )(valid_lens, qp, kpt, values, wv)

    return out[:, :Q, :Dv]


def _reference(queries, keys, values, valid_lens, w_q, w_k, w_v):
    qp = queries @ w_q
    kp = keys @ w_k
    feats = jnp.tanh(qp[:, :, None, :] + kp[:, None, :, :])
    scores = (feats @ w_v)[..., 0]                            # (B, Q, K)
    col = jnp.arange(scores.shape[-1])[None, None, :]
    scores = jnp.where(col < valid_lens[:, None, None], scores, -1e6)
    attn = jax.nn.softmax(scores, axis=-1)
    return attn @ values


if __name__ == "__main__":
    key = jax.random.PRNGKey(0)
    B, Q, K = 2, 6, 10
    query_size, key_size, num_hiddens, value_dim = 16, 24, 32, 12

    kq, kk, kv, kwq, kwk, kwv = jax.random.split(key, 6)
    queries = jax.random.normal(kq, (B, Q, query_size), dtype=jnp.float32)
    keys = jax.random.normal(kk, (B, K, key_size), dtype=jnp.float32)
    values = jax.random.normal(kv, (B, K, value_dim), dtype=jnp.float32)
    valid_lens = jnp.array([3, 7], dtype=jnp.int32)

    # nn.Linear-style uniform init (bias=False), stored transposed vs PyTorch.
    def lin_init(k, fan_in, fan_out):
        bound = 1.0 / (fan_in ** 0.5)
        return jax.random.uniform(k, (fan_in, fan_out), jnp.float32, -bound, bound)

    w_q = lin_init(kwq, query_size, num_hiddens)   # (Dq, H)
    w_k = lin_init(kwk, key_size, num_hiddens)     # (Dk, H)
    w_v = lin_init(kwv, num_hiddens, 1)            # (H, 1)

    ref = _reference(queries, keys, values, valid_lens, w_q, w_k, w_v)

    # Explicit f32 tanh path (accurate path; bf16 only on the MXU dot).
    out_f32 = additive_attention(queries, keys, values, valid_lens, w_q, w_k, w_v,
                                 tanh_dtype=jnp.float32)
    out_f32 = jax.block_until_ready(out_f32)
    assert out_f32.shape == (B, Q, value_dim)
    assert jnp.allclose(out_f32, ref, atol=2e-2, rtol=2e-2), \
        float(jnp.max(jnp.abs(out_f32 - ref)))

    # Auto path: bf16 tanh/storage on v6e/v7x, f32 elsewhere.
    kind = jax.devices()[0].device_kind.lower()
    auto_bf16 = ("v6" in kind) or ("v7" in kind)
    tol = 1e-1 if auto_bf16 else 2e-2
    out_auto = additive_attention(queries, keys, values, valid_lens, w_q, w_k, w_v)
    out_auto = jax.block_until_ready(out_auto)
    assert out_auto.shape == (B, Q, value_dim)
    assert jnp.allclose(out_auto, ref, atol=tol, rtol=tol), \
        float(jnp.max(jnp.abs(out_auto - ref)))

    print("KERNEL_OK")
</pallas_src>

<mosaic_0001>
module attributes {stable_mosaic.version = 11 : i64} {
  func.func @_additive_attention_kernel(%arg0: i32, %arg1: i32, %arg2: i32, %arg3: memref<2xi32, #tpu.memory_space<smem>>, %arg4: memref<1x8x32xf32, #tpu.memory_space<vmem>>, %arg5: memref<1x32x10xf32, #tpu.memory_space<vmem>>, %arg6: memref<1x10x12xf32, #tpu.memory_space<vmem>>, %arg7: memref<1x32xf32, #tpu.memory_space<vmem>>, %arg8: memref<1x8x128xf32, #tpu.memory_space<vmem>>, %arg9: memref<8x1xf32, #tpu.memory_space<vmem>>, %arg10: memref<8x1xf32, #tpu.memory_space<vmem>>, %arg11: memref<8x12xf32, #tpu.memory_space<vmem>>) attributes {dimension_semantics = [#tpu.dimension_semantics<parallel>, #tpu.dimension_semantics<parallel>, #tpu.dimension_semantics<arbitrary>], iteration_bounds = array<i64: 2, 1, 1>, scalar_prefetch = 1 : i64, scratch_operands = 3 : i64, tpu.core_type = #tpu.core_type<tc>, window_params = [{transform_indices = @transform_0, window_bounds = array<i64: 1, 8, 32>}, {transform_indices = @transform_1, window_bounds = array<i64: 1, 32, 10>}, {transform_indices = @transform_2, window_bounds = array<i64: 1, 10, 12>}, {pipeline_mode = #tpu.pipeline_mode<synchronous>, transform_indices = @transform_3, window_bounds = array<i64: 1, 32>}, {transform_indices = @transform_4, window_bounds = array<i64: 1, 8, 128>}]} {
    %0 = arith.index_cast %arg0 : i32 to index
    %1 = memref.load %arg3[%0] : memref<2xi32, #tpu.memory_space<smem>>
    %c10_i32 = arith.constant 10 : i32
    %2 = arith.muli %arg2, %c10_i32 : i32
    %c0_i32 = arith.constant 0 : i32
    %3 = arith.cmpi eq, %arg2, %c0_i32 : i32
    %4 = arith.extui %3 : i1 to i32
    %c0_i32_0 = arith.constant 0 : i32
    %5 = arith.cmpi ne, %4, %c0_i32_0 : i32
    scf.if %5 {
      %cst = arith.constant -1.000000e+30 : f32
      %14 = vector.broadcast %cst : f32 to vector<8x1xf32>
      %c0 = arith.constant 0 : index
      %c0_5 = arith.constant 0 : index
      %15 = vector.load %arg9[%c0, %c0_5] : memref<8x1xf32, #tpu.memory_space<vmem>>, vector<8x1xf32>
      tpu.vector_store %arg9[%c0, %c0_5], %14 {strides = array<i32>} : memref<8x1xf32, #tpu.memory_space<vmem>>, vector<8x1xf32>,
      %cst_6 = arith.constant 0.000000e+00 : f32
      %16 = vector.broadcast %cst_6 : f32 to vector<8x1xf32>
      %c0_7 = arith.constant 0 : index
      %c0_8 = arith.constant 0 : index
      %17 = vector.load %arg10[%c0_7, %c0_8] : memref<8x1xf32, #tpu.memory_space<vmem>>, vector<8x1xf32>
      tpu.vector_store %arg10[%c0_7, %c0_8], %16 {strides = array<i32>} : memref<8x1xf32, #tpu.memory_space<vmem>>, vector<8x1xf32>,
      %cst_9 = arith.constant 0.000000e+00 : f32
      %18 = vector.broadcast %cst_9 : f32 to vector<8x12xf32>
      %c0_10 = arith.constant 0 : index
      %c0_11 = arith.constant 0 : index
      %19 = vector.load %arg11[%c0_10, %c0_11] : memref<8x12xf32, #tpu.memory_space<vmem>>, vector<8x12xf32>
      tpu.vector_store %arg11[%c0_10, %c0_11], %18 {strides = array<i32>} : memref<8x12xf32, #tpu.memory_space<vmem>>, vector<8x12xf32>,
    } else {
    }
    %c0_i32_1 = arith.constant 0 : i32
    %6 = arith.cmpi eq, %1, %c0_i32_1 : i32
    %7 = arith.cmpi slt, %2, %1 : i32
    %8 = arith.ori %6, %7 : i1
    %9 = arith.extui %8 : i1 to i32
    %c0_i32_2 = arith.constant 0 : i32
    %10 = arith.cmpi ne, %9, %c0_i32_2 : i32
    scf.if %10 {
      %c0 = arith.constant 0 : index
      %c0_5 = arith.constant 0 : index
      %c0_6 = arith.constant 0 : index
      %14 = vector.load %arg4[%c0, %c0_5, %c0_6] : memref<1x8x32xf32, #tpu.memory_space<vmem>>, vector<1x8x32xf32>
      %15 = vector.shape_cast %14 : vector<1x8x32xf32> to vector<8x32xf32>
      %c0_7 = arith.constant 0 : index
      %c0_8 = arith.constant 0 : index
      %c0_9 = arith.constant 0 : index
      %16 = vector.load %arg5[%c0_7, %c0_8, %c0_9] : memref<1x32x10xf32, #tpu.memory_space<vmem>>, vector<1x32x10xf32>
      %17 = vector.shape_cast %16 : vector<1x32x10xf32> to vector<32x10xf32>
      %c0_10 = arith.constant 0 : index
      %c0_11 = arith.constant 0 : index
      %18 = vector.load %arg7[%c0_10, %c0_11] : memref<1x32xf32, #tpu.memory_space<vmem>>, vector<1x32xf32>
      %cst = arith.constant 0.000000e+00 : f32
      %19 = vector.broadcast %cst : f32 to vector<8x10xf32>
      %20 = vector.extract_strided_slice %15 {offsets = [0, 0], sizes = [8, 1], strides = [1, 1]} : vector<8x32xf32> to vector<8x1xf32>
      %21 = vector.extract_strided_slice %17 {offsets = [0, 0], sizes = [1, 10], strides = [1, 1]} : vector<32x10xf32> to vector<1x10xf32>
      %22 = vector.broadcast %20 : vector<8x1xf32> to vector<8x10xf32>
      %23 = vector.broadcast %21 : vector<1x10xf32> to vector<8x10xf32>
      %24 = arith.addf %22, %23 : vector<8x10xf32>
      %25 = math.tanh %24 : vector<8x10xf32>
      %26 = vector.extract_strided_slice %18 {offsets = [0, 0], sizes = [1, 1], strides = [1, 1]} : vector<1x32xf32> to vector<1x1xf32>
      %27 = vector.broadcast %26 : vector<1x1xf32> to vector<8x10xf32>
      %28 = arith.mulf %27, %25 : vector<8x10xf32>
      %29 = arith.addf %19, %28 : vector<8x10xf32>
      %30 = vector.extract_strided_slice %15 {offsets = [0, 1], sizes = [8, 1], strides = [1, 1]} : vector<8x32xf32> to vector<8x1xf32>
      %31 = vector.extract_strided_slice %17 {offsets = [1, 0], sizes = [1, 10], strides = [1, 1]} : vector<32x10xf32> to vector<1x10xf32>
      %32 = vector.broadcast %30 : vector<8x1xf32> to vector<8x10xf32>
      %33 = vector.broadcast %31 : vector<1x10xf32> to vector<8x10xf32>
      %34 = arith.addf %32, %33 : vector<8x10xf32>
      %35 = math.tanh %34 : vector<8x10xf32>
      %36 = vector.extract_strided_slice %18 {offsets = [0, 1], sizes = [1, 1], strides = [1, 1]} : vector<1x32xf32> to vector<1x1xf32>
      %37 = vector.broadcast %36 : vector<1x1xf32> to vector<8x10xf32>
      %38 = arith.mulf %37, %35 : vector<8x10xf32>
      %39 = arith.addf %29, %38 : vector<8x10xf32>
      %40 = vector.extract_strided_slice %15 {offsets = [0, 2], sizes = [8, 1], strides = [1, 1]} : vector<8x32xf32> to vector<8x1xf32>
      %41 = vector.extract_strided_slice %17 {offsets = [2, 0], sizes = [1, 10], strides = [1, 1]} : vector<32x10xf32> to vector<1x10xf32>
      %42 = vector.broadcast %40 : vector<8x1xf32> to vector<8x10xf32>
      %43 = vector.broadcast %41 : vector<1x10xf32> to vector<8x10xf32>
      %44 = arith.addf %42, %43 : vector<8x10xf32>
      %45 = math.tanh %44 : vector<8x10xf32>
      %46 = vector.extract_strided_slice %18 {offsets = [0, 2], sizes = [1, 1], strides = [1, 1]} : vector<1x32xf32> to vector<1x1xf32>
      %47 = vector.broadcast %46 : vector<1x1xf32> to vector<8x10xf32>
      %48 = arith.mulf %47, %45 : vector<8x10xf32>
      %49 = arith.addf %39, %48 : vector<8x10xf32>
      %50 = vector.extract_strided_slice %15 {offsets = [0, 3], sizes = [8, 1], strides = [1, 1]} : vector<8x32xf32> to vector<8x1xf32>
      %51 = vector.extract_strided_slice %17 {offsets = [3, 0], sizes = [1, 10], strides = [1, 1]} : vector<32x10xf32> to vector<1x10xf32>
      %52 = vector.broadcast %50 : vector<8x1xf32> to vector<8x10xf32>
      %53 = vector.broadcast %51 : vector<1x10xf32> to vector<8x10xf32>
      %54 = arith.addf %52, %53 : vector<8x10xf32>
      %55 = math.tanh %54 : vector<8x10xf32>
      %56 = vector.extract_strided_slice %18 {offsets = [0, 3], sizes = [1, 1], strides = [1, 1]} : vector<1x32xf32> to vector<1x1xf32>
      %57 = vector.broadcast %56 : vector<1x1xf32> to vector<8x10xf32>
      %58 = arith.mulf %57, %55 : vector<8x10xf32>
      %59 = arith.addf %49, %58 : vector<8x10xf32>
      %60 = vector.extract_strided_slice %15 {offsets = [0, 4], sizes = [8, 1], strides = [1, 1]} : vector<8x32xf32> to vector<8x1xf32>
      %61 = vector.extract_strided_slice %17 {offsets = [4, 0], sizes = [1, 10], strides = [1, 1]} : vector<32x10xf32> to vector<1x10xf32>
      %62 = vector.broadcast %60 : vector<8x1xf32> to vector<8x10xf32>
      %63 = vector.broadcast %61 : vector<1x10xf32> to vector<8x10xf32>
      %64 = arith.addf %62, %63 : vector<8x10xf32>
      %65 = math.tanh %64 : vector<8x10xf32>
      %66 = vector.extract_strided_slice %18 {offsets = [0, 4], sizes = [1, 1], strides = [1, 1]} : vector<1x32xf32> to vector<1x1xf32>
      %67 = vector.broadcast %66 : vector<1x1xf32> to vector<8x10xf32>
      %68 = arith.mulf %67, %65 : vector<8x10xf32>
      %69 = arith.addf %59, %68 : vector<8x10xf32>
      %70 = vector.extract_strided_slice %15 {offsets = [0, 5], sizes = [8, 1], strides = [1, 1]} : vector<8x32xf32> to vector<8x1xf32>
      %71 = vector.extract_strided_slice %17 {offsets = [5, 0], sizes = [1, 10], strides = [1, 1]} : vector<32x10xf32> to vector<1x10xf32>
      %72 = vector.broadcast %70 : vector<8x1xf32> to vector<8x10xf32>
      %73 = vector.broadcast %71 : vector<1x10xf32> to vector<8x10xf32>
      %74 = arith.addf %72, %73 : vector<8x10xf32>
      %75 = math.tanh %74 : vector<8x10xf32>
      %76 = vector.extract_strided_slice %18 {offsets = [0, 5], sizes = [1, 1], strides = [1, 1]} : vector<1x32xf32> to vector<1x1xf32>
      %77 = vector.broadcast %76 : vector<1x1xf32> to vector<8x10xf32>
      %78 = arith.mulf %77, %75 : vector<8x10xf32>
      %79 = arith.addf %69, %78 : vector<8x10xf32>
      %80 = vector.extract_strided_slice %15 {offsets = [0, 6], sizes = [8, 1], strides = [1, 1]} : vector<8x32xf32> to vector<8x1xf32>
      %81 = vector.extract_strided_slice %17 {offsets = [6, 0], sizes = [1, 10], strides = [1, 1]} : vector<32x10xf32> to vector<1x10xf32>
      %82 = vector.broadcast %80 : vector<8x1xf32> to vector<8x10xf32>
      %83 = vector.broadcast %81 : vector<1x10xf32> to vector<8x10xf32>
      %84 = arith.addf %82, %83 : vector<8x10xf32>
      %85 = math.tanh %84 : vector<8x10xf32>
      %86 = vector.extract_strided_slice %18 {offsets = [0, 6], sizes = [1, 1], strides = [1, 1]} : vector<1x32xf32> to vector<1x1xf32>
      %87 = vector.broadcast %86 : vector<1x1xf32> to vector<8x10xf32>
      %88 = arith.mulf %87, %85 : vector<8x10xf32>
      %89 = arith.addf %79, %88 : vector<8x10xf32>
      %90 = vector.extract_strided_slice %15 {offsets = [0, 7], sizes = [8, 1], strides = [1, 1]} : vector<8x32xf32> to vector<8x1xf32>
      %91 = vector.extract_strided_slice %17 {offsets = [7, 0], sizes = [1, 10], strides = [1, 1]} : vector<32x10xf32> to vector<1x10xf32>
      %92 = vector.broadcast %90 : vector<8x1xf32> to vector<8x10xf32>
      %93 = vector.broadcast %91 : vector<1x10xf32> to vector<8x10xf32>
      %94 = arith.addf %92, %93 : vector<8x10xf32>
      %95 = math.tanh %94 : vector<8x10xf32>
      %96 = vector.extract_strided_slice %18 {offsets = [0, 7], sizes = [1, 1], strides = [1, 1]} : vector<1x32xf32> to vector<1x1xf32>
      %97 = vector.broadcast %96 : vector<1x1xf32> to vector<8x10xf32>
      %98 = arith.mulf %97, %95 : vector<8x10xf32>
      %99 = arith.addf %89, %98 : vector<8x10xf32>
      %100 = vector.extract_strided_slice %15 {offsets = [0, 8], sizes = [8, 1], strides = [1, 1]} : vector<8x32xf32> to vector<8x1xf32>
      %101 = vector.extract_strided_slice %17 {offsets = [8, 0], sizes = [1, 10], strides = [1, 1]} : vector<32x10xf32> to vector<1x10xf32>
      %102 = vector.broadcast %100 : vector<8x1xf32> to vector<8x10xf32>
      %103 = vector.broadcast %101 : vector<1x10xf32> to vector<8x10xf32>
      %104 = arith.addf %102, %103 : vector<8x10xf32>
      %105 = math.tanh %104 : vector<8x10xf32>
      %106 = vector.extract_strided_slice %18 {offsets = [0, 8], sizes = [1, 1], strides = [1, 1]} : vector<1x32xf32> to vector<1x1xf32>
      %107 = vector.broadcast %106 : vector<1x1xf32> to vector<8x10xf32>
      %108 = arith.mulf %107, %105 : vector<8x10xf32>
      %109 = arith.addf %99, %108 : vector<8x10xf32>
      %110 = vector.extract_strided_slice %15 {offsets = [0, 9], sizes = [8, 1], strides = [1, 1]} : vector<8x32xf32> to vector<8x1xf32>
      %111 = vector.extract_strided_slice %17 {offsets = [9, 0], sizes = [1, 10], strides = [1, 1]} : vector<32x10xf32> to vector<1x10xf32>
      %112 = vector.broadcast %110 : vector<8x1xf32> to vector<8x10xf32>
      %113 = vector.broadcast %111 : vector<1x10xf32> to vector<8x10xf32>
      %114 = arith.addf %112, %113 : vector<8x10xf32>
      %115 = math.tanh %114 : vector<8x10xf32>
      %116 = vector.extract_strided_slice %18 {offsets = [0, 9], sizes = [1, 1], strides = [1, 1]} : vector<1x32xf32> to vector<1x1xf32>
      %117 = vector.broadcast %116 : vector<1x1xf32> to vector<8x10xf32>
      %118 = arith.mulf %117, %115 : vector<8x10xf32>
      %119 = arith.addf %109, %118 : vector<8x10xf32>
      %120 = vector.extract_strided_slice %15 {offsets = [0, 10], sizes = [8, 1], strides = [1, 1]} : vector<8x32xf32> to vector<8x1xf32>
      %121 = vector.extract_strided_slice %17 {offsets = [10, 0], sizes = [1, 10], strides = [1, 1]} : vector<32x10xf32> to vector<1x10xf32>
      %122 = vector.broadcast %120 : vector<8x1xf32> to vector<8x10xf32>
      %123 = vector.broadcast %121 : vector<1x10xf32> to vector<8x10xf32>
      %124 = arith.addf %122, %123 : vector<8x10xf32>
      %125 = math.tanh %124 : vector<8x10xf32>
      %126 = vector.extract_strided_slice %18 {offsets = [0, 10], sizes = [1, 1], strides = [1, 1]} : vector<1x32xf32> to vector<1x1xf32>
      %127 = vector.broadcast %126 : vector<1x1xf32> to vector<8x10xf32>
      %128 = arith.mulf %127, %125 : vector<8x10xf32>
      %129 = arith.addf %119, %128 : vector<8x10xf32>
      %130 = vector.extract_strided_slice %15 {offsets = [0, 11], sizes = [8, 1], strides = [1, 1]} : vector<8x32xf32> to vector<8x1xf32>
      %131 = vector.extract_strided_slice %17 {offsets = [11, 0], sizes = [1, 10], strides = [1, 1]} : vector<32x10xf32> to vector<1x10xf32>
      %132 = vector.broadcast %130 : vector<8x1xf32> to vector<8x10xf32>
      %133 = vector.broadcast %131 : vector<1x10xf32> to vector<8x10xf32>
      %134 = arith.addf %132, %133 : vector<8x10xf32>
      %135 = math.tanh %134 : vector<8x10xf32>
      %136 = vector.extract_strided_slice %18 {offsets = [0, 11], sizes = [1, 1], strides = [1, 1]} : vector<1x32xf32> to vector<1x1xf32>
      %137 = vector.broadcast %136 : vector<1x1xf32> to vector<8x10xf32>
      %138 = arith.mulf %137, %135 : vector<8x10xf32>
      %139 = arith.addf %129, %138 : vector<8x10xf32>
      %140 = vector.extract_strided_slice %15 {offsets = [0, 12], sizes = [8, 1], strides = [1, 1]} : vector<8x32xf32> to vector<8x1xf32>
      %141 = vector.extract_strided_slice %17 {offsets = [12, 0], sizes = [1, 10], strides = [1, 1]} : vector<32x10xf32> to vector<1x10xf32>
      %142 = vector.broadcast %140 : vector<8x1xf32> to vector<8x10xf32>
      %143 = vector.broadcast %141 : vector<1x10xf32> to vector<8x10xf32>
      %144 = arith.addf %142, %143 : vector<8x10xf32>
      %145 = math.tanh %144 : vector<8x10xf32>
      %146 = vector.extract_strided_slice %18 {offsets = [0, 12], sizes = [1, 1], strides = [1, 1]} : vector<1x32xf32> to vector<1x1xf32>
      %147 = vector.broadcast %146 : vector<1x1xf32> to vector<8x10xf32>
      %148 = arith.mulf %147, %145 : vector<8x10xf32>
      %149 = arith.addf %139, %148 : vector<8x10xf32>
      %150 = vector.extract_strided_slice %15 {offsets = [0, 13], sizes = [8, 1], strides = [1, 1]} : vector<8x32xf32> to vector<8x1xf32>
      %151 = vector.extract_strided_slice %17 {offsets = [13, 0], sizes = [1, 10], strides = [1, 1]} : vector<32x10xf32> to vector<1x10xf32>
      %152 = vector.broadcast %150 : vector<8x1xf32> to vector<8x10xf32>
      %153 = vector.broadcast %151 : vector<1x10xf32> to vector<8x10xf32>
      %154 = arith.addf %152, %153 : vector<8x10xf32>
      %155 = math.tanh %154 : vector<8x10xf32>
      %156 = vector.extract_strided_slice %18 {offsets = [0, 13], sizes = [1, 1], strides = [1, 1]} : vector<1x32xf32> to vector<1x1xf32>
      %157 = vector.broadcast %156 : vector<1x1xf32> to vector<8x10xf32>
      %158 = arith.mulf %157, %155 : vector<8x10xf32>
      %159 = arith.addf %149, %158 : vector<8x10xf32>
      %160 = vector.extract_strided_slice %15 {offsets = [0, 14], sizes = [8, 1], strides = [1, 1]} : vector<8x32xf32> to vector<8x1xf32>
      %161 = vector.extract_strided_slice %17 {offsets = [14, 0], sizes = [1, 10], strides = [1, 1]} : vector<32x10xf32> to vector<1x10xf32>
      %162 = vector.broadcast %160 : vector<8x1xf32> to vector<8x10xf32>
      %163 = vector.broadcast %161 : vector<1x10xf32> to vector<8x10xf32>
      %164 = arith.addf %162, %163 : vector<8x10xf32>
      %165 = math.tanh %164 : vector<8x10xf32>
      %166 = vector.extract_strided_slice %18 {offsets = [0, 14], sizes = [1, 1], strides = [1, 1]} : vector<1x32xf32> to vector<1x1xf32>
      %167 = vector.broadcast %166 : vector<1x1xf32> to vector<8x10xf32>
      %168 = arith.mulf %167, %165 : vector<8x10xf32>
      %169 = arith.addf %159, %168 : vector<8x10xf32>
      %170 = vector.extract_strided_slice %15 {offsets = [0, 15], sizes = [8, 1], strides = [1, 1]} : vector<8x32xf32> to vector<8x1xf32>
      %171 = vector.extract_strided_slice %17 {offsets = [15, 0], sizes = [1, 10], strides = [1, 1]} : vector<32x10xf32> to vector<1x10xf32>
      %172 = vector.broadcast %170 : vector<8x1xf32> to vector<8x10xf32>
      %173 = vector.broadcast %171 : vector<1x10xf32> to vector<8x10xf32>
      %174 = arith.addf %172, %173 : vector<8x10xf32>
      %175 = math.tanh %174 : vector<8x10xf32>
      %176 = vector.extract_strided_slice %18 {offsets = [0, 15], sizes = [1, 1], strides = [1, 1]} : vector<1x32xf32> to vector<1x1xf32>
      %177 = vector.broadcast %176 : vector<1x1xf32> to vector<8x10xf32>
      %178 = arith.mulf %177, %175 : vector<8x10xf32>
      %179 = arith.addf %169, %178 : vector<8x10xf32>
      %180 = vector.extract_strided_slice %15 {offsets = [0, 16], sizes = [8, 1], strides = [1, 1]} : vector<8x32xf32> to vector<8x1xf32>
      %181 = vector.extract_strided_slice %17 {offsets = [16, 0], sizes = [1, 10], strides = [1, 1]} : vector<32x10xf32> to vector<1x10xf32>
      %182 = vector.broadcast %180 : vector<8x1xf32> to vector<8x10xf32>
      %183 = vector.broadcast %181 : vector<1x10xf32> to vector<8x10xf32>
      %184 = arith.addf %182, %183 : vector<8x10xf32>
      %185 = math.tanh %184 : vector<8x10xf32>
      %186 = vector.extract_strided_slice %18 {offsets = [0, 16], sizes = [1, 1], strides = [1, 1]} : vector<1x32xf32> to vector<1x1xf32>
      %187 = vector.broadcast %186 : vector<1x1xf32> to vector<8x10xf32>
      %188 = arith.mulf %187, %185 : vector<8x10xf32>
      %189 = arith.addf %179, %188 : vector<8x10xf32>
      %190 = vector.extract_strided_slice %15 {offsets = [0, 17], sizes = [8, 1], strides = [1, 1]} : vector<8x32xf32> to vector<8x1xf32>
      %191 = vector.extract_strided_slice %17 {offsets = [17, 0], sizes = [1, 10], strides = [1, 1]} : vector<32x10xf32> to vector<1x10xf32>
      %192 = vector.broadcast %190 : vector<8x1xf32> to vector<8x10xf32>
      %193 = vector.broadcast %191 : vector<1x10xf32> to vector<8x10xf32>
      %194 = arith.addf %192, %193 : vector<8x10xf32>
      %195 = math.tanh %194 : vector<8x10xf32>
      %196 = vector.extract_strided_slice %18 {offsets = [0, 17], sizes = [1, 1], strides = [1, 1]} : vector<1x32xf32> to vector<1x1xf32>
      %197 = vector.broadcast %196 : vector<1x1xf32> to vector<8x10xf32>
      %198 = arith.mulf %197, %195 : vector<8x10xf32>
      %199 = arith.addf %189, %198 : vector<8x10xf32>
      %200 = vector.extract_strided_slice %15 {offsets = [0, 18], sizes = [8, 1], strides = [1, 1]} : vector<8x32xf32> to vector<8x1xf32>
      %201 = vector.extract_strided_slice %17 {offsets = [18, 0], sizes = [1, 10], strides = [1, 1]} : vector<32x10xf32> to vector<1x10xf32>
      %202 = vector.broadcast %200 : vector<8x1xf32> to vector<8x10xf32>
      %203 = vector.broadcast %201 : vector<1x10xf32> to vector<8x10xf32>
      %204 = arith.addf %202, %203 : vector<8x10xf32>
      %205 = math.tanh %204 : vector<8x10xf32>
      %206 = vector.extract_strided_slice %18 {offsets = [0, 18], sizes = [1, 1], strides = [1, 1]} : vector<1x32xf32> to vector<1x1xf32>
      %207 = vector.broadcast %206 : vector<1x1xf32> to vector<8x10xf32>
      %208 = arith.mulf %207, %205 : vector<8x10xf32>
      %209 = arith.addf %199, %208 : vector<8x10xf32>
      %210 = vector.extract_strided_slice %15 {offsets = [0, 19], sizes = [8, 1], strides = [1, 1]} : vector<8x32xf32> to vector<8x1xf32>
      %211 = vector.extract_strided_slice %17 {offsets = [19, 0], sizes = [1, 10], strides = [1, 1]} : vector<32x10xf32> to vector<1x10xf32>
      %212 = vector.broadcast %210 : vector<8x1xf32> to vector<8x10xf32>
      %213 = vector.broadcast %211 : vector<1x10xf32> to vector<8x10xf32>
      %214 = arith.addf %212, %213 : vector<8x10xf32>
      %215 = math.tanh %214 : vector<8x10xf32>
      %216 = vector.extract_strided_slice %18 {offsets = [0, 19], sizes = [1, 1], strides = [1, 1]} : vector<1x32xf32> to vector<1x1xf32>
      %217 = vector.broadcast %216 : vector<1x1xf32> to vector<8x10xf32>
      %218 = arith.mulf %217, %215 : vector<8x10xf32>
      %219 = arith.addf %209, %218 : vector<8x10xf32>
      %220 = vector.extract_strided_slice %15 {offsets = [0, 20], sizes = [8, 1], strides = [1, 1]} : vector<8x32xf32> to vector<8x1xf32>
      %221 = vector.extract_strided_slice %17 {offsets = [20, 0], sizes = [1, 10], strides = [1, 1]} : vector<32x10xf32> to vector<1x10xf32>
      %222 = vector.broadcast %220 : vector<8x1xf32> to vector<8x10xf32>
      %223 = vector.broadcast %221 : vector<1x10xf32> to vector<8x10xf32>
      %224 = arith.addf %222, %223 : vector<8x10xf32>
      %225 = math.tanh %224 : vector<8x10xf32>
      %226 = vector.extract_strided_slice %18 {offsets = [0, 20], sizes = [1, 1], strides = [1, 1]} : vector<1x32xf32> to vector<1x1xf32>
      %227 = vector.broadcast %226 : vector<1x1xf32> to vector<8x10xf32>
      %228 = arith.mulf %227, %225 : vector<8x10xf32>
      %229 = arith.addf %219, %228 : vector<8x10xf32>
      %230 = vector.extract_strided_slice %15 {offsets = [0, 21], sizes = [8, 1], strides = [1, 1]} : vector<8x32xf32> to vector<8x1xf32>
      %231 = vector.extract_strided_slice %17 {offsets = [21, 0], sizes = [1, 10], strides = [1, 1]} : vector<32x10xf32> to vector<1x10xf32>
      %232 = vector.broadcast %230 : vector<8x1xf32> to vector<8x10xf32>
      %233 = vector.broadcast %231 : vector<1x10xf32> to vector<8x10xf32>
      %234 = arith.addf %232, %233 : vector<8x10xf32>
      %235 = math.tanh %234 : vector<8x10xf32>
      %236 = vector.extract_strided_slice %18 {offsets = [0, 21], sizes = [1, 1], strides = [1, 1]} : vector<1x32xf32> to vector<1x1xf32>
      %237 = vector.broadcast %236 : vector<1x1xf32> to vector<8x10xf32>
      %238 = arith.mulf %237, %235 : vector<8x10xf32>
      %239 = arith.addf %229, %238 : vector<8x10xf32>
      %240 = vector.extract_strided_slice %15 {offsets = [0, 22], sizes = [8, 1], strides = [1, 1]} : vector<8x32xf32> to vector<8x1xf32>
      %241 = vector.extract_strided_slice %17 {offsets = [22, 0], sizes = [1, 10], strides = [1, 1]} : vector<32x10xf32> to vector<1x10xf32>
      %242 = vector.broadcast %240 : vector<8x1xf32> to vector<8x10xf32>
      %243 = vector.broadcast %241 : vector<1x10xf32> to vector<8x10xf32>
      %244 = arith.addf %242, %243 : vector<8x10xf32>
      %245 = math.tanh %244 : vector<8x10xf32>
      %246 = vector.extract_strided_slice %18 {offsets = [0, 22], sizes = [1, 1], strides = [1, 1]} : vector<1x32xf32> to vector<1x1xf32>
      %247 = vector.broadcast %246 : vector<1x1xf32> to vector<8x10xf32>
      %248 = arith.mulf %247, %245 : vector<8x10xf32>
      %249 = arith.addf %239, %248 : vector<8x10xf32>
      %250 = vector.extract_strided_slice %15 {offsets = [0, 23], sizes = [8, 1], strides = [1, 1]} : vector<8x32xf32> to vector<8x1xf32>
      %251 = vector.extract_strided_slice %17 {offsets = [23, 0], sizes = [1, 10], strides = [1, 1]} : vector<32x10xf32> to vector<1x10xf32>
      %252 = vector.broadcast %250 : vector<8x1xf32> to vector<8x10xf32>
      %253 = vector.broadcast %251 : vector<1x10xf32> to vector<8x10xf32>
      %254 = arith.addf %252, %253 : vector<8x10xf32>
      %255 = math.tanh %254 : vector<8x10xf32>
      %256 = vector.extract_strided_slice %18 {offsets = [0, 23], sizes = [1, 1], strides = [1, 1]} : vector<1x32xf32> to vector<1x1xf32>
      %257 = vector.broadcast %256 : vector<1x1xf32> to vector<8x10xf32>
      %258 = arith.mulf %257, %255 : vector<8x10xf32>
      %259 = arith.addf %249, %258 : vector<8x10xf32>
      %260 = vector.extract_strided_slice %15 {offsets = [0, 24], sizes = [8, 1], strides = [1, 1]} : vector<8x32xf32> to vector<8x1xf32>
      %261 = vector.extract_strided_slice %17 {offsets = [24, 0], sizes = [1, 10], strides = [1, 1]} : vector<32x10xf32> to vector<1x10xf32>
      %262 = vector.broadcast %260 : vector<8x1xf32> to vector<8x10xf32>
      %263 = vector.broadcast %261 : vector<1x10xf32> to vector<8x10xf32>
      %264 = arith.addf %262, %263 : vector<8x10xf32>
      %265 = math.tanh %264 : vector<8x10xf32>
      %266 = vector.extract_strided_slice %18 {offsets = [0, 24], sizes = [1, 1], strides = [1, 1]} : vector<1x32xf32> to vector<1x1xf32>
      %267 = vector.broadcast %266 : vector<1x1xf32> to vector<8x10xf32>
      %268 = arith.mulf %267, %265 : vector<8x10xf32>
      %269 = arith.addf %259, %268 : vector<8x10xf32>
      %270 = vector.extract_strided_slice %15 {offsets = [0, 25], sizes = [8, 1], strides = [1, 1]} : vector<8x32xf32> to vector<8x1xf32>
      %271 = vector.extract_strided_slice %17 {offsets = [25, 0], sizes = [1, 10], strides = [1, 1]} : vector<32x10xf32> to vector<1x10xf32>
      %272 = vector.broadcast %270 : vector<8x1xf32> to vector<8x10xf32>
      %273 = vector.broadcast %271 : vector<1x10xf32> to vector<8x10xf32>
      %274 = arith.addf %272, %273 : vector<8x10xf32>
      %275 = math.tanh %274 : vector<8x10xf32>
      %276 = vector.extract_strided_slice %18 {offsets = [0, 25], sizes = [1, 1], strides = [1, 1]} : vector<1x32xf32> to vector<1x1xf32>
      %277 = vector.broadcast %276 : vector<1x1xf32> to vector<8x10xf32>
      %278 = arith.mulf %277, %275 : vector<8x10xf32>
      %279 = arith.addf %269, %278 : vector<8x10xf32>
      %280 = vector.extract_strided_slice %15 {offsets = [0, 26], sizes = [8, 1], strides = [1, 1]} : vector<8x32xf32> to vector<8x1xf32>
      %281 = vector.extract_strided_slice %17 {offsets = [26, 0], sizes = [1, 10], strides = [1, 1]} : vector<32x10xf32> to vector<1x10xf32>
      %282 = vector.broadcast %280 : vector<8x1xf32> to vector<8x10xf32>
      %283 = vector.broadcast %281 : vector<1x10xf32> to vector<8x10xf32>
      %284 = arith.addf %282, %283 : vector<8x10xf32>
      %285 = math.tanh %284 : vector<8x10xf32>
      %286 = vector.extract_strided_slice %18 {offsets = [0, 26], sizes = [1, 1], strides = [1, 1]} : vector<1x32xf32> to vector<1x1xf32>
      %287 = vector.broadcast %286 : vector<1x1xf32> to vector<8x10xf32>
      %288 = arith.mulf %287, %285 : vector<8x10xf32>
      %289 = arith.addf %279, %288 : vector<8x10xf32>
      %290 = vector.extract_strided_slice %15 {offsets = [0, 27], sizes = [8, 1], strides = [1, 1]} : vector<8x32xf32> to vector<8x1xf32>
      %291 = vector.extract_strided_slice %17 {offsets = [27, 0], sizes = [1, 10], strides = [1, 1]} : vector<32x10xf32> to vector<1x10xf32>
      %292 = vector.broadcast %290 : vector<8x1xf32> to vector<8x10xf32>
      %293 = vector.broadcast %291 : vector<1x10xf32> to vector<8x10xf32>
      %294 = arith.addf %292, %293 : vector<8x10xf32>
      %295 = math.tanh %294 : vector<8x10xf32>
      %296 = vector.extract_strided_slice %18 {offsets = [0, 27], sizes = [1, 1], strides = [1, 1]} : vector<1x32xf32> to vector<1x1xf32>
      %297 = vector.broadcast %296 : vector<1x1xf32> to vector<8x10xf32>
      %298 = arith.mulf %297, %295 : vector<8x10xf32>
      %299 = arith.addf %289, %298 : vector<8x10xf32>
      %300 = vector.extract_strided_slice %15 {offsets = [0, 28], sizes = [8, 1], strides = [1, 1]} : vector<8x32xf32> to vector<8x1xf32>
      %301 = vector.extract_strided_slice %17 {offsets = [28, 0], sizes = [1, 10], strides = [1, 1]} : vector<32x10xf32> to vector<1x10xf32>
      %302 = vector.broadcast %300 : vector<8x1xf32> to vector<8x10xf32>
      %303 = vector.broadcast %301 : vector<1x10xf32> to vector<8x10xf32>
      %304 = arith.addf %302, %303 : vector<8x10xf32>
      %305 = math.tanh %304 : vector<8x10xf32>
      %306 = vector.extract_strided_slice %18 {offsets = [0, 28], sizes = [1, 1], strides = [1, 1]} : vector<1x32xf32> to vector<1x1xf32>
      %307 = vector.broadcast %306 : vector<1x1xf32> to vector<8x10xf32>
      %308 = arith.mulf %307, %305 : vector<8x10xf32>
      %309 = arith.addf %299, %308 : vector<8x10xf32>
      %310 = vector.extract_strided_slice %15 {offsets = [0, 29], sizes = [8, 1], strides = [1, 1]} : vector<8x32xf32> to vector<8x1xf32>
      %311 = vector.extract_strided_slice %17 {offsets = [29, 0], sizes = [1, 10], strides = [1, 1]} : vector<32x10xf32> to vector<1x10xf32>
      %312 = vector.broadcast %310 : vector<8x1xf32> to vector<8x10xf32>
      %313 = vector.broadcast %311 : vector<1x10xf32> to vector<8x10xf32>
      %314 = arith.addf %312, %313 : vector<8x10xf32>
      %315 = math.tanh %314 : vector<8x10xf32>
      %316 = vector.extract_strided_slice %18 {offsets = [0, 29], sizes = [1, 1], strides = [1, 1]} : vector<1x32xf32> to vector<1x1xf32>
      %317 = vector.broadcast %316 : vector<1x1xf32> to vector<8x10xf32>
      %318 = arith.mulf %317, %315 : vector<8x10xf32>
      %319 = arith.addf %309, %318 : vector<8x10xf32>
      %320 = vector.extract_strided_slice %15 {offsets = [0, 30], sizes = [8, 1], strides = [1, 1]} : vector<8x32xf32> to vector<8x1xf32>
      %321 = vector.extract_strided_slice %17 {offsets = [30, 0], sizes = [1, 10], strides = [1, 1]} : vector<32x10xf32> to vector<1x10xf32>
      %322 = vector.broadcast %320 : vector<8x1xf32> to vector<8x10xf32>
      %323 = vector.broadcast %321 : vector<1x10xf32> to vector<8x10xf32>
      %324 = arith.addf %322, %323 : vector<8x10xf32>
      %325 = math.tanh %324 : vector<8x10xf32>
      %326 = vector.extract_strided_slice %18 {offsets = [0, 30], sizes = [1, 1], strides = [1, 1]} : vector<1x32xf32> to vector<1x1xf32>
      %327 = vector.broadcast %326 : vector<1x1xf32> to vector<8x10xf32>
      %328 = arith.mulf %327, %325 : vector<8x10xf32>
      %329 = arith.addf %319, %328 : vector<8x10xf32>
      %330 = vector.extract_strided_slice %15 {offsets = [0, 31], sizes = [8, 1], strides = [1, 1]} : vector<8x32xf32> to vector<8x1xf32>
      %331 = vector.extract_strided_slice %17 {offsets = [31, 0], sizes = [1, 10], strides = [1, 1]} : vector<32x10xf32> to vector<1x10xf32>
      %332 = vector.broadcast %330 : vector<8x1xf32> to vector<8x10xf32>
      %333 = vector.broadcast %331 : vector<1x10xf32> to vector<8x10xf32>
      %334 = arith.addf %332, %333 : vector<8x10xf32>
      %335 = math.tanh %334 : vector<8x10xf32>
      %336 = vector.extract_strided_slice %18 {offsets = [0, 31], sizes = [1, 1], strides = [1, 1]} : vector<1x32xf32> to vector<1x1xf32>
      %337 = vector.broadcast %336 : vector<1x1xf32> to vector<8x10xf32>
      %338 = arith.mulf %337, %335 : vector<8x10xf32>
      %339 = arith.addf %329, %338 : vector<8x10xf32>
      %340 = tpu.iota {dimensions = array<i32: 1>} : vector<8x10xi32>
      %341 = vector.broadcast %2 : i32 to vector<8x10xi32>
      %342 = arith.addi %341, %340 : vector<8x10xi32>
      %343 = vector.broadcast %1 : i32 to vector<8x10xi32>
      %344 = arith.cmpi slt, %342, %343 : vector<8x10xi32>
      %cst_12 = arith.constant -1.000000e+06 : f32
      %345 = vector.broadcast %cst_12 : f32 to vector<8x10xf32>
      %346 = arith.select %344, %339, %345 : vector<8x10xi1>, vector<8x10xf32>
      %c0_13 = arith.constant 0 : index
      %c0_14 = arith.constant 0 : index
      %347 = vector.load %arg9[%c0_13, %c0_14] : memref<8x1xf32, #tpu.memory_space<vmem>>, vector<8x1xf32>
      %cst_15 = arith.constant dense<0xFF800000> : vector<8xf32>
      %348 = vector.multi_reduction <maximumf>, %346, %cst_15 [1] : vector<8x10xf32> to vector<8xf32>
      %349 = vector.shape_cast %348 : vector<8xf32> to vector<8x1xf32>
      %350 = arith.maximumf %347, %349 : vector<8x1xf32>
      %351 = arith.subf %347, %350 : vector<8x1xf32>
      %352 = math.exp %351 : vector<8x1xf32>
      %353 = vector.broadcast %350 : vector<8x1xf32> to vector<8x10xf32>
      %354 = arith.subf %346, %353 : vector<8x10xf32>
      %355 = math.exp %354 : vector<8x10xf32>
      %c0_16 = arith.constant 0 : index
      %c0_17 = arith.constant 0 : index
      %356 = vector.load %arg10[%c0_16, %c0_17] : memref<8x1xf32, #tpu.memory_space<vmem>>, vector<8x1xf32>
      %357 = arith.mulf %352, %356 : vector<8x1xf32>
      %cst_18 = arith.constant dense<0.000000e+00> : vector<8xf32>
      %358 = vector.multi_reduction <add>, %355, %cst_18 [1] : vector<8x10xf32> to vector<8xf32>
      %359 = vector.shape_cast %358 : vector<8xf32> to vector<8x1xf32>
      %360 = arith.addf %357, %359 : vector<8x1xf32>
      %c0_19 = arith.constant 0 : index
      %c0_20 = arith.constant 0 : index
      %361 = vector.load %arg10[%c0_19, %c0_20] : memref<8x1xf32, #tpu.memory_space<vmem>>, vector<8x1xf32>
      tpu.vector_store %arg10[%c0_19, %c0_20], %360 {strides = array<i32>} : memref<8x1xf32, #tpu.memory_space<vmem>>, vector<8x1xf32>,
      %c0_21 = arith.constant 0 : index
      %c0_22 = arith.constant 0 : index
      %362 = vector.load %arg11[%c0_21, %c0_22] : memref<8x12xf32, #tpu.memory_space<vmem>>, vector<8x12xf32>
      %363 = vector.broadcast %352 : vector<8x1xf32> to vector<8x12xf32>
      %364 = arith.mulf %363, %362 : vector<8x12xf32>
      %365 = arith.truncf %355 : vector<8x10xf32> to vector<8x10xbf16>
      %c0_23 = arith.constant 0 : index
      %c0_24 = arith.constant 0 : index
      %c0_25 = arith.constant 0 : index
      %366 = vector.load %arg6[%c0_23, %c0_24, %c0_25] : memref<1x10x12xf32, #tpu.memory_space<vmem>>, vector<1x10x12xf32>
      %367 = vector.shape_cast %366 : vector<1x10x12xf32> to vector<10x12xf32>
      %368 = arith.truncf %367 : vector<10x12xf32> to vector<10x12xbf16>
      %cst_26 = arith.constant dense<0.000000e+00> : vector<8x12xf32>
      %369 = tpu.matmul %365, %368, %cst_26 {dimension_numbers = #tpu.dot_dimension_numbers<[1], [0], [0], [1], [0, 0, 1, 1], [], []>} : vector<8x10xbf16>, vector<10x12xbf16>, vector<8x12xf32> -> vector<8x12xf32>
      %370 = arith.addf %364, %369 : vector<8x12xf32>
      %c0_27 = arith.constant 0 : index
      %c0_28 = arith.constant 0 : index
      %371 = vector.load %arg11[%c0_27, %c0_28] : memref<8x12xf32, #tpu.memory_space<vmem>>, vector<8x12xf32>
      tpu.vector_store %arg11[%c0_27, %c0_28], %370 {strides = array<i32>} : memref<8x12xf32, #tpu.memory_space<vmem>>, vector<8x12xf32>,
      %c0_29 = arith.constant 0 : index
      %c0_30 = arith.constant 0 : index
      %372 = vector.load %arg9[%c0_29, %c0_30] : memref<8x1xf32, #tpu.memory_space<vmem>>, vector<8x1xf32>
      tpu.vector_store %arg9[%c0_29, %c0_30], %350 {strides = array<i32>} : memref<8x1xf32, #tpu.memory_space<vmem>>, vector<8x1xf32>,
    } else {
    }
    %c0_i32_3 = arith.constant 0 : i32
    %11 = arith.cmpi eq, %arg2, %c0_i32_3 : i32
    %12 = arith.extui %11 : i1 to i32
    %c0_i32_4 = arith.constant 0 : i32
    %13 = arith.cmpi ne, %12, %c0_i32_4 : i32
    scf.if %13 {
      %c0 = arith.constant 0 : index
      %c0_5 = arith.constant 0 : index
      %14 = vector.load %arg11[%c0, %c0_5] : memref<8x12xf32, #tpu.memory_space<vmem>>, vector<8x12xf32>
      %c0_6 = arith.constant 0 : index
      %c0_7 = arith.constant 0 : index
      %15 = vector.load %arg10[%c0_6, %c0_7] : memref<8x1xf32, #tpu.memory_space<vmem>>, vector<8x1xf32>
      %16 = vector.broadcast %15 : vector<8x1xf32> to vector<8x12xf32>
      %17 = arith.divf %14, %16 : vector<8x12xf32>
      %cst = arith.constant 0.000000e+00 : f32
      %18 = vector.broadcast %cst : f32 to vector<8x116xf32>
      %19 = tpu.concatenate %17, %18 in 1 : vector<8x12xf32>, vector<8x116xf32> -> vector<8x128xf32>
      %c0_8 = arith.constant 0 : index
      %c0_9 = arith.constant 0 : index
      %c0_10 = arith.constant 0 : index
      %20 = vector.load %arg8[%c0_8, %c0_9, %c0_10] : memref<1x8x128xf32, #tpu.memory_space<vmem>>, vector<1x8x128xf32>
      %21 = vector.shape_cast %20 : vector<1x8x128xf32> to vector<8x128xf32>
      %22 = vector.shape_cast %19 : vector<8x128xf32> to vector<1x8x128xf32>
      tpu.vector_store %arg8[%c0_8, %c0_9, %c0_10], %22 {strides = array<i32>} : memref<1x8x128xf32, #tpu.memory_space<vmem>>, vector<1x8x128xf32>,
    } else {
    }
    return
  }
  func.func @transform_0(%arg0: i32, %arg1: i32, %arg2: i32, %arg3: memref<2xi32, #tpu.memory_space<smem>>) -> (i32, i32, i32) {
    %c0_i32 = arith.constant 0 : i32
    %c0_i32_0 = arith.constant 0 : i32
    return %arg0, %arg1, %c0_i32 : i32, i32, i32
  }
  func.func @transform_1(%arg0: i32, %arg1: i32, %arg2: i32, %arg3: memref<2xi32, #tpu.memory_space<smem>>) -> (i32, i32, i32) {
    %c0_i32 = arith.constant 0 : i32
    %c0_i32_0 = arith.constant 0 : i32
    return %arg0, %c0_i32, %arg2 : i32, i32, i32
  }
  func.func @transform_2(%arg0: i32, %arg1: i32, %arg2: i32, %arg3: memref<2xi32, #tpu.memory_space<smem>>) -> (i32, i32, i32) {
    %c0_i32 = arith.constant 0 : i32
    %c0_i32_0 = arith.constant 0 : i32
    return %arg0, %arg2, %c0_i32 : i32, i32, i32
  }
  func.func @transform_3(%arg0: i32, %arg1: i32, %arg2: i32, %arg3: memref<2xi32, #tpu.memory_space<smem>>) -> (i32, i32) {
    %c0_i32 = arith.constant 0 : i32
    %c0_i32_0 = arith.constant 0 : i32
    %c0_i32_1 = arith.constant 0 : i32
    return %c0_i32, %c0_i32_0 : i32, i32
  }
  func.func @transform_4(%arg0: i32, %arg1: i32, %arg2: i32, %arg3: memref<2xi32, #tpu.memory_space<smem>>) -> (i32, i32, i32) {
    %c0_i32 = arith.constant 0 : i32
    %c0_i32_0 = arith.constant 0 : i32
    return %arg0, %arg1, %c0_i32 : i32, i32, i32
  }
}

</mosaic_0001>

<bundles_post_ra>
// kernel: tpu_custom_call.1
= control target key start
LH: loop header
LB: loop body
LE: loop exit
PB: predicated region body
PF: predicated region fallthrough
CT: control target
= control target key end

     0   :  { %s1855_s0 = inlined_call_operand.vmem [shape: s32[2], index: 0, kind: input, shape index: {}]   ;;  %s1856_s1 = inlined_call_operand.vmem [shape: f32[2,8,32], index: 1, kind: input, shape index: {}]   ;;  %s1857_s2 = inlined_call_operand.vmem [shape: f32[2,32,10], index: 2, kind: input, shape index: {}]   ;;  %s1858_s3 = inlined_call_operand.vmem [shape: f32[2,10,12], index: 3, kind: input, shape index: {}]   ;;  %s1859_s4 = inlined_call_operand.vmem [shape: f32[1,32], index: 4, kind: input, shape index: {}]   ;;  %s1860_s5 = inlined_call_operand.hbm [shape: f32[2,8,128], index: 5, kind: output, shape index: {}]  }
   0x1   :  { %s10_s20 = sshll.u32 %s1855_s0, 4  ;;  %s11_s20 = int_to_ptr.vmem [resolvable:$true] %s10_s20 }
   0x2   :  { %s1331_s21 = scalar_lea.vmem %s11_s20, 16  ;;  %p1336_p1 = scmp.lt.s32.totalorder %s11_s20, %s11_s20 }
   0x3   :  { %p1332_p0 = scmp.ne.s32.totalorder %s11_s20, %s1331_s21  ;;  %p1337_p2 = scmp.lt.s32.totalorder %s1331_s21, %s1331_s21 }
   0x5   :  { %p1338_p3 = por %p1337_p2, %p1336_p1 }
   0x7   :  { %p1339_p4 = pnand %p1338_p3, %p1332_p0 }
   0x9   :  { %1342 = shalt.err (!%p1339_p4)  }
   0xa   :  { %s1425_s22 = smov [#allocation6]  }
   0xb   :  { %13 = dma.vmem_to_smem %s11_s20, 16, %s1425_s22, [#allocation5] }
   0xc   :  { %1395 = dma.done.wait [#allocation5], 16 }
   0xd   :  { %1396 = vsyncadd [#allocation5], 4294967280 }
   0xe   :  { %15 = sfence }
   0xf   :  { %16 = vsyncpa [#allocation8], 0 }
  0x10   :  { %18 = vsyncpa [#allocation8 + $0x1], 0  ;;  %s1497_s23 = smov 0   ;;  %s1499_s24 = smov 0  }
  0x11   :  { %s1501_s0 = smov 0   ;;  %s1503_s25 = smov 0  }
  0x12   :  { %s1505_s26 = smov 0   ;;  %s1507_s27 = smov 0  }
  0x13 LB: > { %s1075_s28 = sadd.s32 4294967295, %s1423_s27   ;;  %s1076_s29 = sadd.s32 4294967294, %s1423_s27   ;;  %s1423_s27 = sphi %s1507_s27, %s24_s27   ;;  %s1419_s26 = sphi %s1505_s26, %s1869_s26   ;;  %s1415_s25 = sphi %s1503_s25, %s1868_s25   ;;  %s1411_s0 = sphi %s1501_s0, %s1867_s0   ;;  %s1407_s24 = sphi %s1499_s24, %s1866_s24   ;;  %s1403_s23 = sphi %s1497_s23, %s1865_s23  }
  0x14   : > { %s43_s30 = sadd.s32 1, %s1419_s26  ;;  %s157_s6 = sadd.s32 1, %s1411_s0 }
  0x15   : > { %p45_p5 = scmp.ge.s32.totalorder %s43_s30, 2  ;;  %p167_p6 = scmp.ne.s32.totalorder %s1411_s0, %s1407_s24 }
  0x16   : > { %p168_p7 = scmp.eq.s32.totalorder %s1075_s28, 1  ;;  %p173_p8 = scmp.ne.s32.totalorder %s1407_s24, %s1403_s23 }
  0x17   : > { %s1871_s30 = smov (%p45_p5, %s43_s30), 0  ;;  %p174_p10 = scmp.eq.s32.totalorder %s1076_s29, 1 }
  0x18   : > { %p1537_p9 = por %p168_p7, %p167_p6  ;;  %s152_s8 = ssub.s32 %s1419_s26, %s1871_s30 }
  0x19   : > { %p1079_p11 = scmp.ge.s32.totalorder %s1423_s27, 1  ;;  %p155_p12 = scmp.eq.s32.totalorder %s152_s8, 0 }
  0x1a   : > { %p1544_p13 = por %p174_p10, %p173_p8  ;;  %p229_p0 = scmp.lt.s32.totalorder %s1423_s27, 3 }
  0x1b   : > { %s1550_s10 = scalar_select %p155_p12, %s1411_s0, %s157_s6  }
  0x1c   : > { %p230_p1 = pnand %p1079_p11, %p229_p0 }
  0x1d   : > { %s1861_s11 = sand.u32 (!%p230_p1), 1, %s1407_s24   ;;  %p274_p2 = scmp.lt.s32.totalorder (!%p230_p1), %s1415_s25, 1  ;;  %vm306_vm0 = vcmask (!%p230_p1), 7168   ;;  %v1426_v0 = vmov (!%p230_p1), -1e+30   ;;  %v1427_v1 = vmov (!%p230_p1), 0.0  }
  0x1e   : > { %233 = sbr.rel (%p230_p1) target bundleno = 1045 (0x415), region = 36  ;;  %s1556_s12 = sshll.u32 (!%p230_p1), %s1861_s11, 3  ;;  %307 = vst.msk [vmem:[#allocation2] sm:$0xff] (!%p230_p1), %vm306_vm0, %v1426_v0  ;;  %308 = vst.msk [vmem:[#allocation3] sm:$0xff] (!%p230_p1), %vm306_vm0, %v1427_v1  ;;  %vm309_vm1 = vcmask (!%p230_p1), 97280  }
  0x1f   : > { %s1559_s13 = sld [smem:[#allocation6 + %s1415_s25]] (!%p230_p1)  ;;  %310 = vst.msk [vmem:[#allocation4] sm:$0xff] (!%p230_p1), %vm309_vm1, %v1427_v1  ;;  %s273_s11 = scalar_lea.vmem (!%p230_p1), [#allocation7], %s1556_s12 }
  0x25   : > { %s275_s14 = scalar_select %p274_p2, %s1415_s25, 1 }
  0x26   : > { %p311_p3 = scmp.eq.s32.totalorder %s1559_s13, 0  ;;  %p1086_p4 = scmp.gt.s32.totalorder %s1559_s13, 0 }
  0x27   : > { %s1081_s15 = sshll.u32 %s275_s14, 3  ;;  %s1093_s16 = sshll.u32 %s275_s14, 5 }
  0x28   : > { %s280_s19 = scalar_lea.vmem %s1856_s1, %s1081_s15  ;;  %s1571_s22 = scalar_lea.vmem %s1857_s2, %s1093_s16 }
  0x29   : > { %s1094_s28 = sshll.u32 %s275_s14, 4  ;;  %p313_p5 = por %p1086_p4, %p311_p3 }
  0x2a   : > { %s1577_s8 = scalar_lea.vmem %s1858_s3, %s1094_s28  ;;  %v1581_v2 = vld [vmem:[%s280_s19] sm:$0xff] (%p313_p5)  ;;  %v1428_v3 = vmov (%p313_p5), 2   ;;  %v1429_v4 = vmov (%p313_p5), 1   ;;  %v1430_v5 = vmov (%p313_p5), 3   ;;  %v1431_v6 = vmov (%p313_p5), 0  }
  0x2b   : > { %316 = sbr.rel (!%p313_p5) target bundleno = 887 (0x377), region = 44  ;;  %1198 = vset.pattern.permute.xlu1 (%p313_p5), %v1428_v3  ;;  %1196 = vset.pattern.permute.xlu0 (%p313_p5), %v1429_v4  ;;  %v1591_v7 = vld [vmem:[%s1859_s4] ss:$0 sm:$0xff] (%p313_p5)  ;;  %v1432_v8 = vmov (%p313_p5), 4   ;;  %v1433_v9 = vmov (%p313_p5), 6   ;;  %v1434_v10 = vmov (%p313_p5), 10   ;;  %v328_v33 = vlaneseq (%p313_p5) }
  0x2c   : > { %362 = vperm.xlu1 (%p313_p5), %1198, %v1581_v2   ;;  %346 = vperm.xlu0 (%p313_p5), %1196, %v1581_v2   ;;  %v1435_v11 = vmov (%p313_p5), 7   ;;  %v1436_v12 = vmov (%p313_p5), 5   ;;  %v1437_v13 = vmov (%p313_p5), 8   ;;  %v1438_v14 = vmov (%p313_p5), 13   ;;  %v1661_v39 = vld [vmem:[%s1571_s22] sm:$0xff] (%p313_p5) }
  0x2d   : > { %v1439_v15 = vmov (%p313_p5), 9   ;;  %v1440_v16 = vmov (%p313_p5), 16   ;;  %v1441_v17 = vmov (%p313_p5), 11   ;;  %v1442_v18 = vmov (%p313_p5), 19  }
  0x2e   : > { %v1443_v19 = vmov (%p313_p5), 12   ;;  %v1444_v20 = vmov (%p313_p5), 14   ;;  %v1445_v21 = vmov (%p313_p5), 22   ;;  %v1446_v22 = vmov (%p313_p5), 17  }
  0x2f   : > { %v1447_v23 = vmov (%p313_p5), 25   ;;  %v1448_v24 = vmov (%p313_p5), 15   ;;  %v1449_v25 = vmov (%p313_p5), 20   ;;  %v1450_v26 = vmov (%p313_p5), 28  }
  0x30   : > { %1199 = vset.pattern.permute.xlu1 (%p313_p5), %v1430_v5  ;;  %1197 = vset.pattern.permute.xlu0 (%p313_p5), %v1431_v6  ;;  %v1451_v27 = vmov (%p313_p5), 23   ;;  %v1452_v28 = vmov (%p313_p5), 31   ;;  %v1453_v29 = vmov (%p313_p5), 18   ;;  %v1454_v30 = vmov (%p313_p5), 27  }
  0x31   : > { %378 = vperm.xlu1 (%p313_p5), %1199, %v1581_v2   ;;  %325 = vperm.xlu0 (%p313_p5), %1197, %v1581_v2   ;;  %v1455_v31 = vmov (%p313_p5), 30   ;;  %v1456_v32 = vmov (%p313_p5), 21   ;;  %v1651_v34 = vshrl.u32 (%p313_p5), %v328_v33, 7  ;;  %v1457_v47 = vmov (%p313_p5), 24  }
  0x32   : > { %v1458_v57 = vmov 26   ;;  %vm849_vm3 = vcmask 80896   ;;  %vm887_vm4 = vcmask 1044480   ;;  %vm1461_vm5 = vmmov 0  }
  0x33   : > { %v1655_v35 = vsub.s32 0, %v1651_v34  ;;  %v1658_v38 = vsub.s32 1, %v1651_v34  ;;  %v1664_v40 = vsub.s32 2, %v1651_v34  ;;  %v1678_v52 = vsub.s32 3, %v1651_v34 }
  0x34   : > { %v1685_v59 = vsub.s32 4, %v1651_v34 }
  0x35   : > { %1200 = vset.pattern.permute.xlu1 %v1432_v8  ;;  %340 = vperm.xlu0 %1197, %v1591_v7   ;;  %v331_v41 = vrot.slane %v1661_v39, %v1655_v35  ;;  %v352_v42 = vrot.slane %v1661_v39, %v1658_v38  ;;  %v368_v45 = vrot.slane %v1661_v39, %v1664_v40 }
  0x36   : > { %394 = vperm.xlu1 %1200, %v1581_v2   ;;  %v384_v56 = vrot.slane %v1661_v39, %v1678_v52 }
  0x39   : > { %1205 = vset.pattern.permute.xlu0 %v1428_v3  ;;  %v400_v3 = vrot.slane %v1661_v39, %v1685_v59 }
  0x3a   : > { %1201 = vset.pattern.permute.xlu1 %v1433_v9  ;;  %372 = vperm.xlu0 %1205, %v1591_v7  }
  0x3b   : > { %426 = vperm.xlu1 %1201, %v1581_v2  }
  0x3e   : > { %1208 = vset.pattern.permute.xlu0 %v1434_v10 }
  0x3f   : > { %1202 = vset.pattern.permute.xlu1 %v1435_v11  ;;  %490 = vperm.xlu0 %1208, %v1581_v2  }
  0x40   : > { %442 = vperm.xlu1 %1202, %v1581_v2  }
  0x43   : > { %1209 = vset.pattern.permute.xlu0 %v1436_v12 }
  0x44   : > { %1203 = vset.pattern.permute.xlu1 %v1429_v4  ;;  %410 = vperm.xlu0 %1209, %v1581_v2  }
  0x45   : > { %356 = vperm.xlu1 %1203, %v1591_v7  }
  0x48   : > { %420 = vperm.xlu0 %1209, %v1591_v7  }
  0x49   : > { %1204 = vset.pattern.permute.xlu1 %v1437_v13 }
  0x4a   : > { %458 = vperm.xlu1 %1204, %v1581_v2  }
  0x4c   : > { %1214 = vset.pattern.permute.xlu0 %v1438_v14 }
  0x4d   : > { %538 = vperm.xlu0 %1214, %v1581_v2  }
  0x4e   : > { %1206 = vset.pattern.permute.xlu1 %v1439_v15 }
  0x4f   : > { %474 = vperm.xlu1 %1206, %v1581_v2  }
  0x51   : > { %1217 = vset.pattern.permute.xlu0 %v1437_v13 }
  0x52   : > { %468 = vperm.xlu0 %1217, %v1591_v7  }
  0x53   : > { %1207 = vset.pattern.permute.xlu1 %v1430_v5 }
  0x54   : > { %388 = vperm.xlu1 %1207, %v1591_v7  }
  0x56   : > { %1220 = vset.pattern.permute.xlu0 %v1440_v16 }
  0x57   : > { %586 = vperm.xlu0 %1220, %v1581_v2  }
  0x58   : > { %1210 = vset.pattern.permute.xlu1 %v1432_v8 }
  0x59   : > { %404 = vperm.xlu1 %1210, %v1591_v7  }
  0x5b   : > { %1223 = vset.pattern.permute.xlu0 %v1441_v17 }
  0x5c   : > { %516 = vperm.xlu0 %1223, %v1591_v7  }
  0x5d   : > { %1211 = vset.pattern.permute.xlu1 %v1441_v17 }
  0x5e   : > { %506 = vperm.xlu1 %1211, %v1581_v2  }
  0x60   : > { %1226 = vset.pattern.permute.xlu0 %v1442_v18 }
  0x61   : > { %634 = vperm.xlu0 %1226, %v1581_v2  }
  0x62   : > { %1212 = vset.pattern.permute.xlu1 %v1443_v19 }
  0x63   : > { %522 = vperm.xlu1 %1212, %v1581_v2  }
  0x65   : > { %1229 = vset.pattern.permute.xlu0 %v1444_v20 }
  0x66   : > { %564 = vperm.xlu0 %1229, %v1591_v7  }
  0x67   : > { %1213 = vset.pattern.permute.xlu1 %v1433_v9 }
  0x68   : > { %436 = vperm.xlu1 %1213, %v1591_v7  }
  0x6a   : > { %1232 = vset.pattern.permute.xlu0 %v1445_v21 }
  0x6b   : > { %682 = vperm.xlu0 %1232, %v1581_v2  }
  0x6c   : > { %1215 = vset.pattern.permute.xlu1 %v1435_v11  ;;  %v1693_v11 = vsub.s32 5, %v1651_v34 }
  0x6d   : > { %452 = vperm.xlu1 %1215, %v1591_v7  }
  0x6f   : > { %1235 = vset.pattern.permute.xlu0 %v1446_v22 }
  0x70   : > { %612 = vperm.xlu0 %1235, %v1591_v7  }
  0x71   : > { %1216 = vset.pattern.permute.xlu1 %v1444_v20 }
  0x72   : > { %554 = vperm.xlu1 %1216, %v1581_v2  }
  0x74   : > { %1238 = vset.pattern.permute.xlu0 %v1447_v23 }
  0x75   : > { %730 = vperm.xlu0 %1238, %v1581_v2  }
  0x76   : > { %1218 = vset.pattern.permute.xlu1 %v1448_v24 }
  0x77   : > { %570 = vperm.xlu1 %1218, %v1581_v2  }
  0x79   : > { %1241 = vset.pattern.permute.xlu0 %v1449_v25 }
  0x7a   : > { %660 = vperm.xlu0 %1241, %v1591_v7  }
  0x7b   : > { %1219 = vset.pattern.permute.xlu1 %v1439_v15  ;;  %v1702_v15 = vsub.s32 6, %v1651_v34 }
  0x7c   : > { %484 = vperm.xlu1 %1219, %v1591_v7  }
  0x7e   : > { %1244 = vset.pattern.permute.xlu0 %v1450_v26 }
  0x7f   : > { %778 = vperm.xlu0 %1244, %v1581_v2  }
  0x80   : > { %1221 = vset.pattern.permute.xlu1 %v1434_v10 }
  0x81   : > { %500 = vperm.xlu1 %1221, %v1591_v7  }
  0x83   : > { %1247 = vset.pattern.permute.xlu0 %v1451_v27 }
  0x84   : > { %708 = vperm.xlu0 %1247, %v1591_v7  }
  0x85   : > { %1222 = vset.pattern.permute.xlu1 %v1446_v22  ;;  %v432_v22 = vrot.slane %v1661_v39, %v1702_v15 }
  0x86   : > { %602 = vperm.xlu1 %1222, %v1581_v2  }
  0x88   : > { %1250 = vset.pattern.permute.xlu0 %v1452_v28 }
  0x89   : > { %826 = vperm.xlu0 %1250, %v1581_v2  }
  0x8a   : > { %1224 = vset.pattern.permute.xlu1 %v1453_v29 }
  0x8b   : > { %618 = vperm.xlu1 %1224, %v1581_v2  }
  0x8d   : > { %1253 = vset.pattern.permute.xlu0 %v1454_v30 }
  0x8e   : > { %772 = vperm.xlu0 %1253, %v1591_v7  }
  0x8f   : > { %1225 = vset.pattern.permute.xlu1 %v1443_v19 }
  0x90   : > { %532 = vperm.xlu1 %1225, %v1591_v7  }
  0x92   : > { %1256 = vset.pattern.permute.xlu0 %v1455_v31 }
  0x93   : > { %820 = vperm.xlu0 %1256, %v1591_v7  }
  0x94   : > { %1227 = vset.pattern.permute.xlu1 %v1438_v14  ;;  %v416_v14 = vrot.slane %v1661_v39, %v1693_v11 }
  0x95   : > { %548 = vperm.xlu1 %1227, %v1591_v7  }
  0x97   : > { %1258 = vset.pattern.permute.xlu0 %v1431_v6 }
  0x99   : > { %1228 = vset.pattern.permute.xlu1 %v1449_v25  ;;  %v1459_v25 = vmov 29  }
  0x9a   : > { %650 = vperm.xlu1 %1228, %v1581_v2  }
  0x9e   : > { %1230 = vset.pattern.permute.xlu1 %v1456_v32 }
  0x9f   : > { %666 = vperm.xlu1 %1230, %v1581_v2  }
  0xa3   : > { %1231 = vset.pattern.permute.xlu1 %v1448_v24  ;;  %v1708_v24 = vsub.s32 7, %v1651_v34 }
  0xa4   : > { %580 = vperm.xlu1 %1231, %v1591_v7  }
  0xa8   : > { %1233 = vset.pattern.permute.xlu1 %v1440_v16 }
  0xa9   : > { %596 = vperm.xlu1 %1233, %v1591_v7  }
  0xab   : > { %v363_v36 = vpop.permute.xlu1 %362  ;;  %v347_v37 = vpop.permute.xlu0 %346 }
  0xac   : > { %v353_v48 = vadd.f32 %v352_v42, %v347_v37  ;;  %v369_v50 = vadd.f32 %v368_v45, %v363_v36  ;;  %v448_v36 = vrot.slane %v1661_v39, %v1708_v24 }
  0xad   : > { %1234 = vset.pattern.permute.xlu1 %v1451_v27 }
  0xae   : > { %698 = vperm.xlu1 %1234, %v1581_v2  }
  0xb0   : > { %v379_v43 = vpop.permute.xlu1 %378  ;;  %v326_v44 = vpop.permute.xlu0 %325 }
  0xb1   : > { %v332_v46 = vadd.f32 %v331_v41, %v326_v44  ;;  %v385_v0 = vadd.f32 %v384_v56, %v379_v43 }
  0xb2   : > { %1236 = vset.pattern.permute.xlu1 %v1457_v47 }
  0xb3   : > { %714 = vperm.xlu1 %1236, %v1581_v2   ;;  %1260 = vtanh.f32 %v332_v46 }
  0xb4   : > { %1262 = vtanh.f32 %v353_v48  ;;  %v341_v53 = vpop.permute.xlu0 %340 }
  0xb5   : > { %v395_v49 = vpop.permute.xlu1 %394  ;;  %1264 = vtanh.f32 %v369_v50 }
  0xb6   : > { %1266 = vtanh.f32 %v385_v0  ;;  %v401_v10 = vadd.f32 %v400_v3, %v395_v49 }
  0xb7   : > { %1237 = vset.pattern.permute.xlu1 %v1453_v29 }
  0xb8   : > { %628 = vperm.xlu1 %1237, %v1591_v7   ;;  %1268 = vtanh.f32 %v401_v10 }
  0xb9   : > { %v373_v62 = vpop.permute.xlu0 %372 }
  0xba   : > { %v427_v51 = vpop.permute.xlu1 %426 }
  0xbc   : > { %1239 = vset.pattern.permute.xlu1 %v1442_v18 }
  0xbd   : > { %644 = vperm.xlu1 %1239, %v1591_v7   ;;  %v1261_v55 = vpop.eup %1260 }
  0xbe   : > { %v1263_v58 = vpop.eup %1262  ;;  %v343_v60 = vmul.f32 %v1261_v55, %v341_v53  ;;  %v1695_v12 = vpop.permute.xlu0 %490 }
  0xbf   : > { %v443_v54 = vpop.permute.xlu1 %442  ;;  %v1265_v61 = vpop.eup %1264 }
  0xc0   : > { %v375_v4 = vmul.f32 %v1265_v61, %v373_v62  ;;  %v1267_v17 = vpop.eup %1266  ;;  %v449_v42 = vadd.f32 %v448_v36, %v443_v54 }
  0xc1   : > { %1240 = vset.pattern.permute.xlu1 %v1458_v57 }
  0xc2   : > { %746 = vperm.xlu1 %1240, %v1581_v2   ;;  %v1269_v29 = vpop.eup %1268 }
  0xc3   : > { %v411_v16 = vpop.permute.xlu0 %410 }
  0xc4   : > { %v357_v63 = vpop.permute.xlu1 %356  ;;  %v417_v18 = vadd.f32 %v416_v14, %v411_v16 }
  0xc5   : > { %v359_v1 = vmul.f32 %v1263_v58, %v357_v63 }
  0xc6   : > { %1242 = vset.pattern.permute.xlu1 %v1454_v30  ;;  %1270 = vtanh.f32 %v417_v18 }
  0xc7   : > { %v360_v5 = vadd.f32 %v359_v1, %v343_v60  ;;  %762 = vperm.xlu1 %1242, %v1581_v2   ;;  %v421_v45 = vpop.permute.xlu0 %420 }
  0xc9   : > { %v459_v8 = vpop.permute.xlu1 %458  ;;  %v376_v9 = vadd.f32 %v375_v4, %v360_v5 }
  0xcb   : > { %1243 = vset.pattern.permute.xlu1 %v1456_v32  ;;  %v433_v32 = vadd.f32 %v432_v22, %v427_v51 }
  0xcc   : > { %676 = vperm.xlu1 %1243, %v1591_v7  }
  0xcd   : > { %1272 = vtanh.f32 %v433_v32 }
  0xce   : > { %v475_v13 = vpop.permute.xlu1 %474  ;;  %1274 = vtanh.f32 %v449_v42 }
  0xd0   : > { %1245 = vset.pattern.permute.xlu1 %v1445_v21  ;;  %v1712_v21 = vld [vmem:[%s1571_s22 + $0x8] sm:$0xff]  ;;  %v1271_v46 = vpop.eup %1270 }
  0xd1   : > { %692 = vperm.xlu1 %1245, %v1591_v7   ;;  %v464_v41 = vrot.slane %v1712_v21, %v1655_v35  ;;  %v423_v48 = vmul.f32 %v1271_v46, %v421_v45  ;;  %v512_v62 = vrot.slane %v1712_v21, %v1678_v52 }
  0xd3   : > { %v389_v19 = vpop.permute.xlu1 %388  ;;  %v465_v44 = vadd.f32 %v464_v41, %v459_v8 }
  0xd4   : > { %v391_v20 = vmul.f32 %v1267_v17, %v389_v19 }
  0xd5   : > { %1246 = vset.pattern.permute.xlu1 %v1459_v25  ;;  %1276 = vtanh.f32 %v465_v44  ;;  %v544_v44 = vrot.slane %v1712_v21, %v1693_v11 }
  0xd6   : > { %v392_v27 = vadd.f32 %v391_v20, %v376_v9  ;;  %794 = vperm.xlu1 %1246, %v1581_v2  }
  0xd8   : > { %v405_v30 = vpop.permute.xlu1 %404 }
  0xd9   : > { %v407_v37 = vmul.f32 %v1269_v29, %v405_v30 }
  0xda   : > { %1248 = vset.pattern.permute.xlu1 %v1455_v31  ;;  %v1724_v31 = vpop.permute.xlu0 %538 }
  0xdb   : > { %v408_v34 = vadd.f32 %v407_v37, %v392_v27  ;;  %810 = vperm.xlu1 %1248, %v1581_v2   ;;  %v1273_v2 = vpop.eup %1272  ;;  %v545_v46 = vadd.f32 %v544_v44, %v1724_v31 }
  0xdc   : > { %v1275_v54 = vpop.eup %1274 }
  0xdd   : > { %v507_v43 = vpop.permute.xlu1 %506  ;;  %v424_v50 = vadd.f32 %v423_v48, %v408_v34  ;;  %v560_v48 = vrot.slane %v1712_v21, %v1702_v15 }
  0xde   : > { %v469_v56 = vpop.permute.xlu0 %468  ;;  %v513_v4 = vadd.f32 %v512_v62, %v507_v43 }
  0xdf   : > { %1249 = vset.pattern.permute.xlu1 %v1457_v47  ;;  %v480_v47 = vrot.slane %v1712_v21, %v1658_v38  ;;  %v1277_v55 = vpop.eup %1276 }
  0xe0   : > { %724 = vperm.xlu1 %1249, %v1591_v7   ;;  %v471_v63 = vmul.f32 %v1277_v55, %v469_v56 }
  0xe1   : > { %v481_v60 = vadd.f32 %v480_v47, %v475_v13 }
  0xe2   : > { %v523_v39 = vpop.permute.xlu1 %522 }
  0xe3   : > { %1278 = vtanh.f32 %v481_v60 }
  0xe4   : > { %1251 = vset.pattern.permute.xlu1 %v1447_v23  ;;  %v496_v23 = vrot.slane %v1712_v21, %v1664_v40 }
  0xe5   : > { %740 = vperm.xlu1 %1251, %v1591_v7  }
  0xe7   : > { %v437_v49 = vpop.permute.xlu1 %436 }
  0xe8   : > { %v439_v51 = vmul.f32 %v1273_v2, %v437_v49 }
  0xe9   : > { %1252 = vset.pattern.permute.xlu1 %v1458_v57  ;;  %v497_v57 = vadd.f32 %v496_v23, %v1695_v12  ;;  %v528_v12 = vrot.slane %v1712_v21, %v1685_v59 }
  0xea   : > { %v440_v53 = vadd.f32 %v439_v51, %v424_v50  ;;  %756 = vperm.xlu1 %1252, %v1591_v7   ;;  %v576_v50 = vrot.slane %v1712_v21, %v1708_v24 }
  0xeb   : > { %1280 = vtanh.f32 %v497_v57  ;;  %v529_v19 = vadd.f32 %v528_v12, %v523_v39  ;;  %v320_v39 = vld [vmem:[%s1571_s22 + $0x10] sm:$0xff] }
  0xec   : > { %v453_v58 = vpop.permute.xlu1 %452  ;;  %1282 = vtanh.f32 %v513_v4  ;;  %v592_v49 = vrot.slane %v320_v39, %v1655_v35  ;;  %v608_v23 = vrot.slane %v320_v39, %v1658_v38  ;;  %v640_v31 = vrot.slane %v320_v39, %v1678_v52 }
  0xed   : > { %v455_v61 = vmul.f32 %v1275_v54, %v453_v58  ;;  %v1279_v8 = vpop.eup %1278  ;;  %1284 = vtanh.f32 %v529_v19  ;;  %v624_v56 = vrot.slane %v320_v39, %v1664_v40  ;;  %v688_v4 = vrot.slane %v320_v39, %v1702_v15 }
  0xee   : > { %1254 = vset.pattern.permute.xlu1 %v1450_v26  ;;  %v587_v26 = vpop.permute.xlu0 %586  ;;  %1286 = vtanh.f32 %v545_v46 }
  0xef   : > { %v456_v0 = vadd.f32 %v455_v61, %v440_v53  ;;  %788 = vperm.xlu1 %1254, %v1591_v7   ;;  %v593_v47 = vadd.f32 %v592_v49, %v587_v26  ;;  %v672_v26 = vrot.slane %v320_v39, %v1693_v11 }
  0xf1   : > { %v555_v1 = vpop.permute.xlu1 %554  ;;  %v472_v3 = vadd.f32 %v471_v63, %v456_v0 }
  0xf2   : > { %v517_v17 = vpop.permute.xlu0 %516  ;;  %v561_v51 = vadd.f32 %v560_v48, %v555_v1 }
  0xf3   : > { %1255 = vset.pattern.permute.xlu1 %v1459_v25 }
  0xf4   : > { %804 = vperm.xlu1 %1255, %v1591_v7   ;;  %1288 = vtanh.f32 %v561_v51 }
  0xf5   : > { %v1281_v13 = vpop.eup %1280  ;;  %1290 = vtanh.f32 %v593_v47 }
  0xf6   : > { %v571_v5 = vpop.permute.xlu1 %570  ;;  %v1283_v16 = vpop.eup %1282 }
  0xf7   : > { %v519_v22 = vmul.f32 %v1283_v16, %v517_v17  ;;  %v1285_v29 = vpop.eup %1284  ;;  %v577_v54 = vadd.f32 %v576_v50, %v571_v5  ;;  %v635_v55 = vpop.permute.xlu0 %634 }
  0xf8   : > { %1257 = vset.pattern.permute.xlu1 %v1452_v28  ;;  %v1287_v60 = vpop.eup %1286  ;;  %v641_v21 = vadd.f32 %v640_v31, %v635_v55 }
  0xf9   : > { %836 = vperm.xlu1 %1257, %v1591_v7   ;;  %1292 = vtanh.f32 %v577_v54 }
  0xfb   : > { %v485_v9 = vpop.permute.xlu1 %484  ;;  %v565_v61 = vpop.permute.xlu0 %564 }
  0xfc   : > { %v487_v10 = vmul.f32 %v1279_v8, %v485_v9 }
  0xfd   : > { %1259 = vset.pattern.permute.xlu1 %v1431_v6 }
  0xfe   : > { %v488_v14 = vadd.f32 %v487_v10, %v472_v3  ;;  %v656_v3 = vrot.slane %v320_v39, %v1685_v59  ;;  %v1289_v5 = vpop.eup %1288 }
  0xff   : > { %v683_v1 = vpop.permute.xlu0 %682  ;;  %v1291_v8 = vpop.eup %1290 }
 0x100   : > { %v501_v18 = vpop.permute.xlu1 %500  ;;  %v689_v16 = vadd.f32 %v688_v4, %v683_v1 }
 0x101   : > { %v503_v20 = vmul.f32 %v1281_v13, %v501_v18 }
 0x103   : > { %v504_v28 = vadd.f32 %v503_v20, %v488_v14  ;;  %v1293_v10 = vpop.eup %1292  ;;  %v567_v14 = vmul.f32 %v1289_v5, %v565_v61  ;;  %v613_v18 = vpop.permute.xlu0 %612  ;;  %v1765_v20 = vld [vmem:[%s1571_s22 + $0x18] sm:$0xff] }
 0x104   : > { %v752_v51 = vrot.slane %v1765_v20, %v1664_v40 }
 0x105   : > { %v603_v7 = vpop.permute.xlu1 %602  ;;  %v520_v25 = vadd.f32 %v519_v22, %v504_v28 }
 0x106   : > { %v609_v62 = vadd.f32 %v608_v23, %v603_v7  ;;  %v704_v7 = vrot.slane %v320_v39, %v1708_v24 }
 0x108   : > { %1294 = vtanh.f32 %v609_v62 }
 0x109   : > { %1296 = vtanh.f32 %v641_v21 }
 0x10a   : > { %v619_v27 = vpop.permute.xlu1 %618 }
 0x10b   : > { %v625_v63 = vadd.f32 %v624_v56, %v619_v27 }
 0x10d   : > { %1298 = vtanh.f32 %v625_v63 }
 0x10f   : > { %v533_v30 = vpop.permute.xlu1 %532 }
 0x110   : > { %v535_v32 = vmul.f32 %v1285_v29, %v533_v30 }
 0x112   : > { %v536_v36 = vadd.f32 %v535_v32, %v520_v25  ;;  %v736_v25 = vrot.slane %v1765_v20, %v1658_v38  ;;  %v1295_v30 = vpop.eup %1294  ;;  %v731_v32 = vpop.permute.xlu0 %730 }
 0x114   : > { %v549_v37 = vpop.permute.xlu1 %548  ;;  %v737_v44 = vadd.f32 %v736_v25, %v731_v32 }
 0x115   : > { %v551_v0 = vmul.f32 %v1287_v60, %v549_v37  ;;  %v1297_v37 = vpop.eup %1296 }
 0x116   : > { %v661_v50 = vpop.permute.xlu0 %660 }
 0x117   : > { %v552_v9 = vadd.f32 %v551_v0, %v536_v36  ;;  %v720_v36 = vrot.slane %v1765_v20, %v1655_v35 }
 0x119   : > { %v651_v6 = vpop.permute.xlu1 %650  ;;  %v568_v22 = vadd.f32 %v567_v14, %v552_v9 }
 0x11a   : > { %v657_v12 = vadd.f32 %v656_v3, %v651_v6 }
 0x11c   : > { %1300 = vtanh.f32 %v657_v12 }
 0x11d   : > { %1302 = vtanh.f32 %v689_v16 }
 0x11e   : > { %v667_v41 = vpop.permute.xlu1 %666 }
 0x11f   : > { %v673_v19 = vadd.f32 %v672_v26, %v667_v41  ;;  %v1299_v41 = vpop.eup %1298  ;;  %v832_v26 = vrot.slane %v1765_v20, %v1708_v24 }
 0x121   : > { %1304 = vtanh.f32 %v673_v19 }
 0x123   : > { %v581_v34 = vpop.permute.xlu1 %580 }
 0x124   : > { %v583_v17 = vmul.f32 %v1293_v10, %v581_v34 }
 0x126   : > { %v584_v27 = vadd.f32 %v583_v17, %v568_v22  ;;  %v1301_v47 = vpop.eup %1300 }
 0x127   : > { %v1303_v54 = vpop.eup %1302  ;;  %v663_v56 = vmul.f32 %v1301_v47, %v661_v50 }
 0x128   : > { %v597_v42 = vpop.permute.xlu1 %596 }
 0x129   : > { %v599_v28 = vmul.f32 %v1291_v8, %v597_v42  ;;  %v615_v42 = vmul.f32 %v1295_v30, %v613_v18 }
 0x12b   : > { %v600_v6 = vadd.f32 %v599_v28, %v584_v27  ;;  %v1305_v23 = vpop.eup %1304 }
 0x12d   : > { %v1743_v43 = vpop.permute.xlu1 %698  ;;  %v616_v38 = vadd.f32 %v615_v42, %v600_v6 }
 0x12e   : > { %v705_v34 = vadd.f32 %v704_v7, %v1743_v43  ;;  %v768_v43 = vrot.slane %v1765_v20, %v1678_v52  ;;  %v800_v52 = vrot.slane %v1765_v20, %v1693_v11 }
 0x130   : > { %1306 = vtanh.f32 %v705_v34 }
 0x131   : > { %1308 = vtanh.f32 %v737_v44 }
 0x132   : > { %v1747_v45 = vpop.permute.xlu1 %714 }
 0x133   : > { %v721_v39 = vadd.f32 %v720_v36, %v1747_v45  ;;  %v784_v45 = vrot.slane %v1765_v20, %v1685_v59  ;;  %v816_v59 = vrot.slane %v1765_v20, %v1702_v15 }
 0x135   : > { %1310 = vtanh.f32 %v721_v39  ;;  %v842_v39 = vand.u32 127, %v328_v33 }
 0x137   : > { %v629_v2 = vpop.permute.xlu1 %628 }
 0x138   : > { %v631_v46 = vmul.f32 %v1299_v41, %v629_v2 }
 0x13a   : > { %v632_v35 = vadd.f32 %v631_v46, %v616_v38  ;;  %v1307_v1 = vpop.eup %1306 }
 0x13b   : > { %v1309_v4 = vpop.eup %1308 }
 0x13c   : > { %v645_v53 = vpop.permute.xlu1 %644 }
 0x13d   : > { %v647_v49 = vmul.f32 %v1297_v37, %v645_v53  ;;  %v779_v53 = vpop.permute.xlu0 %778 }
 0x13e   : > { %v785_v21 = vadd.f32 %v784_v45, %v779_v53  ;;  %v882_v45 = vld [vmem:[%s1577_s8 + $0x8] sm:$0x3]  ;;  %v1460_v53 = vmov 0.0  }
 0x13f   : > { %v648_v55 = vadd.f32 %v647_v49, %v632_v35  ;;  %v1311_v5 = vpop.eup %1310  ;;  %1097 = vmatprep.subr.bf16.mxu0 %v1460_v53  ;;  %1099 = vmatprep.mubr.msk.bf16.mxu0 %vm1461_vm5, %v1460_v53 }
 0x141   : > { %v1759_v58 = vpop.permute.xlu1 %746  ;;  %v664_v61 = vadd.f32 %v663_v56, %v648_v55  ;;  %v709_v3 = vpop.permute.xlu0 %708 }
 0x142   : > { %v753_v31 = vadd.f32 %v752_v51, %v1759_v58 }
 0x144   : > { %1312 = vtanh.f32 %v753_v31 }
 0x145   : > { %v827_v12 = vpop.permute.xlu0 %826 }
 0x146   : > { %v763_v57 = vpop.permute.xlu1 %762  ;;  %v833_v16 = vadd.f32 %v832_v26, %v827_v12 }
 0x147   : > { %v769_v40 = vadd.f32 %v768_v43, %v763_v57  ;;  %v711_v57 = vmul.f32 %v1307_v1, %v709_v3  ;;  %v848_v43 = vld [vmem:[#allocation2] sm:$0xff] }
 0x149   : > { %1314 = vtanh.f32 %v769_v40  ;;  %v773_v7 = vpop.permute.xlu0 %772 }
 0x14a   : > { %1316 = vtanh.f32 %v785_v21 }
 0x14b   : > { %v677_v13 = vpop.permute.xlu1 %676 }
 0x14c   : > { %v679_v60 = vmul.f32 %v1305_v23, %v677_v13  ;;  %v881_v23 = vld [vmem:[%s1577_s8] sm:$0xff] }
 0x14d   : > { %v821_v37 = vpop.permute.xlu0 %820  ;;  %v883_v31 = vpack.c.bf16 %v882_v45, %v881_v23 }
 0x14e   : > { %v680_v0 = vadd.f32 %v679_v60, %v664_v61  ;;  %v1313_v18 = vpop.eup %1312 }
 0x14f   : > { %v889_v56 = vsel %vm887_vm4, %v883_v31, 0 }
 0x150   : > { %v693_v29 = vpop.permute.xlu1 %692  ;;  %1098 = vmatpush3.bf16.msra.mxu0 %v889_v56 }
 0x151   : > { %v695_v62 = vmul.f32 %v1303_v54, %v693_v29 }
 0x153   : > { %v696_v58 = vadd.f32 %v695_v62, %v680_v0  ;;  %v1315_v28 = vpop.eup %1314 }
 0x154   : > { %v1317_v24 = vpop.eup %1316  ;;  %v775_v20 = vmul.f32 %v1315_v28, %v773_v7 }
 0x155   : > { %v795_v48 = vpop.permute.xlu1 %794  ;;  %v712_v11 = vadd.f32 %v711_v57, %v696_v58 }
 0x156   : > { %v801_v8 = vadd.f32 %v800_v52, %v795_v48  ;;  %v845_v48 = vstv %s1559_s13  ;;  %v865_v52 = vld [vmem:[#allocation3] sm:$0xff] }
 0x157   : > { %vm846_vm2 = vcmp.lt.s32.totalorder %v842_v39, %v845_v48 }
 0x158   : > { %1318 = vtanh.f32 %v801_v8 }
 0x15a   : > { %v811_v2 = vpop.permute.xlu1 %810 }
 0x15b   : > { %v817_v13 = vadd.f32 %v816_v59, %v811_v2 }
 0x15d   : > { %1320 = vtanh.f32 %v817_v13 }
 0x15e   : > { %1322 = vtanh.f32 %v833_v16 }
 0x15f   : > { %v725_v63 = vpop.permute.xlu1 %724 }
 0x160   : > { %v727_v9 = vmul.f32 %v1311_v5, %v725_v63 }
 0x162   : > { %v728_v17 = vadd.f32 %v727_v9, %v712_v11  ;;  %v1319_v32 = vpop.eup %1318 }
 0x164   : > { %v741_v10 = vpop.permute.xlu1 %740 }
 0x165   : > { %v743_v14 = vmul.f32 %v1309_v4, %v741_v10  ;;  %v873_v4 = vld [vmem:[#allocation4] sm:$0xff] }
 0x167   : > { %v744_v19 = vadd.f32 %v743_v14, %v728_v17  ;;  %v1321_v36 = vpop.eup %1320 }
 0x168   : > { %v1323_v42 = vpop.eup %1322  ;;  %v823_v44 = vmul.f32 %v1321_v36, %v821_v37 }
 0x169   : > { %v757_v15 = vpop.permute.xlu1 %756 }
 0x16a   : > { %v759_v22 = vmul.f32 %v1313_v18, %v757_v15 }
 0x16c   : > { %v760_v25 = vadd.f32 %v759_v22, %v744_v19 }
 0x16e   : > { %v789_v27 = vpop.permute.xlu1 %788  ;;  %v776_v29 = vadd.f32 %v775_v20, %v760_v25 }
 0x16f   : > { %v791_v30 = vmul.f32 %v1317_v24, %v789_v27 }
 0x171   : > { %v792_v41 = vadd.f32 %v791_v30, %v776_v29 }
 0x173   : > { %v805_v6 = vpop.permute.xlu1 %804 }
 0x174   : > { %v807_v34 = vmul.f32 %v1319_v32, %v805_v6 }
 0x176   : > { %v808_v46 = vadd.f32 %v807_v34, %v792_v41 }
 0x178   : > { %v837_v38 = vpop.permute.xlu1 %836  ;;  %v824_v49 = vadd.f32 %v823_v44, %v808_v46 }
 0x179   : > { %v839_v50 = vmul.f32 %v1323_v42, %v837_v38 }
 0x17b   : > { %v840_v51 = vadd.f32 %v839_v50, %v824_v49 }
 0x17d   : > { %v847_v35 = vsel %vm846_vm2, %v840_v51, -1000000.0 }
 0x17e   : > { %v850_v47 = vsel %vm849_vm3, %v847_v35, -inf }
 0x17f   : > { %851 = vmax.xlane.f32.xlu1 %v850_v47 }
 0x20c   : > { %v852_v54 = vpop.xlane.xlu1 %851 }
 0x20d   : > { %v853_v55 = vmax.f32 %v848_v43, %v852_v54 }
 0x20f   : > { %v854_v2 = vsub.f32 %v848_v43, %v853_v55  ;;  %934 = vst.msk [vmem:[#allocation2] sm:$0xff] %vm306_vm0, %v853_v55  ;;  %859 = vperm.xlu0 %1258, %v853_v55  }
 0x211   : > { %v855_v33 = vmul.f32 1.442695, %v854_v2 }
 0x213   : > { %1324 = vpow2.f32 %v855_v33 }
 0x21d   : > { %v1325_v60 = vpop.eup %1324 }
 0x21e   : > { %876 = vperm.xlu1 %1259, %v1325_v60   ;;  %v866_v1 = vmul.f32 %v1325_v60, %v865_v52 }
 0x28e   : > { %v860_v40 = vpop.permute.xlu0 %859 }
 0x28f   : > { %v862_v61 = vsub.f32 %v847_v35, %v860_v40 }
 0x291   : > { %v863_v62 = vmul.f32 1.442695, %v862_v61 }
 0x293   : > { %1326 = vpow2.f32 %v863_v62 }
 0x29d   : > { %v1327_v21 = vpop.eup %1326  ;;  %v877_v58 = vpop.permute.xlu1 %876 }
 0x29e   : > { %v867_v63 = vsel %vm849_vm3, %v1327_v21, 0.0  ;;  %v880_v0 = vpack.c.bf16 %v1327_v21, %v1327_v21  ;;  %v879_v5 = vmul.f32 %v877_v58, %v873_v4 }
 0x29f   : > { %868 = vadd.xlane.f32.xlu0 %v867_v63 }
 0x2a0   : > { %1100 = vmatmul.mubr.msk.bf16.vlgmr.msra.gmra.mrb[0].mxu0 %vm849_vm3, %v880_v0 }
 0x32c   : > { %v869_v3 = vpop.xlane.xlu0 %868 }
 0x32d   : > { %v870_v59 = vadd.f32 %v869_v3, %v866_v1 }
 0x32f   : > { %872 = vst.msk [vmem:[#allocation3] sm:$0xff] %vm306_vm0, %v870_v59 }
 0x373   : > { %v925_v57 = vpop.f32.mrb[0].mxu0 }
 0x374   : > { %v931_v26 = vadd.f32 %v925_v57, %v879_v5  ;;  %v1101_v8 = vpop.f32.mrb[1].mxu0 }
 0x375   : > { %v928_v9 = vpop.f32.mrb[2].mxu0 }
 0x376   : > { %933 = vst.msk [vmem:[#allocation4] sm:$0xff] %vm309_vm1, %v931_v26  ;;  %v1102_v10 = vpop.f32.mrb[3].mxu0 }
 0x377 PF: > { %v939_v12 = vld [vmem:[#allocation3] sm:$0xff]  ;;  %v1462_v13 = vmov 0   ;;  %s1090_s13 = sshll.u32 %s1415_s25, 7  ;;  %s965_s16 = sshll.u32 %s273_s11, 4  ;;  %s1805_s16 = int_to_ptr.vmem [resolvable:$true] %s965_s16 }
 0x378   : > { %1328 = vset.pattern.permute.xlu0 %v1462_v13  ;;  %s1803_s19 = scalar_lea.hbm %s1860_s5, %s1090_s13  ;;  %s1864_s20 = sand.u32 1, %s1407_s24  }
 0x379   : > { %942 = vperm.xlu0 %1328, %v939_v12   ;;  %s951_s25 = scalar_lea.sflag [#allocation8], %s1864_s20  ;;  %s1343_s21 = scalar_lea.vmem %s1805_s16, 128 }
 0x37a   : > { %p1344_p6 = scmp.ne.s32.totalorder %s1805_s16, %s1343_s21  ;;  %s1463_s22 = smov [#allocation7]  }
 0x37b   : > { %s1347_s28 = sshll.u32 %s1463_s22, 4  ;;  %s1348_s28 = int_to_ptr.vmem [resolvable:$false] %s1347_s28 }
 0x37c   : > { %p1345_p7 = pnand %p1344_p6, %p1537_p9  ;;  %s1349_s29 = scalar_lea.vmem %s1348_s28, 256 }
 0x37d   : > { %v938_v14 = vld [vmem:[#allocation4] sm:$0xff]  ;;  %p1350_p10 = scmp.lt.s32.totalorder %s1805_s16, %s1348_s28  ;;  %p1351_p11 = scmp.lt.s32.totalorder %s1349_s29, %s1343_s21 }
 0x37e   : > { %p1346_p8 = pneg %p1345_p7 }
 0x37f   : > { %p1352_p12 = por %p1351_p11, %p1350_p10 }
 0x381   : > { %p1353_p0 = pnand %p1352_p12, %p1346_p8 }
 0x3f8   : > { %v943_v11 = vpop.permute.xlu0 %942 }
 0x3f9   : > { %1329 = vrcp.f32 %v943_v11 }
 0x403   : > { %v1330_v16 = vpop.eup %1329 }
 0x404   : > { %v946_v17 = vmul.f32 %v1330_v16, %v938_v14 }
 0x406   : > { %v948_v18 = vsel %vm309_vm1, %v946_v17, 0.0 }
 0x407   : > { %949 = vst [vmem:[%s273_s11] sm:$0xff] %v948_v18 }
 0x408   : > { %1356 = shalt.err (!%p1353_p0)
}
 0x409   : > { %s1357_s11 = scalar_lea.hbm %s1803_s19, 128  ;;  %s1361_s8 = scalar_lea.hbm %s1860_s5, 256 }
 0x40a   : > { %p1358_p1 = scmp.ne.s32.totalorder %s1803_s19, %s1357_s11  ;;  %p1362_p4 = scmp.lt.u32.totalorder %s1803_s19, %s1860_s5 }
 0x40b   : > { %p1363_p5 = scmp.lt.u32.totalorder %s1361_s8, %s1357_s11  ;;  %p1365_p7 = scmp.lt.u32.totalorder %s1357_s11, %s1803_s19 }
 0x40c   : > { %p1359_p2 = pnand %p1358_p1, %p1537_p9 }
 0x40d   : > { %p1364_p6 = por %p1363_p5, %p1362_p4 }
 0x40e   : > { %p1360_p3 = pneg %p1359_p2 }
 0x40f   : > { %p1366_p8 = por %p1365_p7, %p1364_p6 }
 0x411   : > { %p1367_p10 = pnand %p1366_p8, %p1360_p3 }
 0x413   : > { %1370 = shalt.err (!%p1367_p10)
}
 0x414   : > { %1103 = dma.vmem_to_hbm [thread:$0]  (%p1537_p9), %s1805_s16, 128, %s1803_s19, %s951_s25  }
 0x415 PF: > { %p1109_p11 = scmp.ge.s32.totalorder %s1423_s27, 2  ;;  %s977_s13 = sand.u32 1, %s1403_s23  }
 0x416   : > { %s978_s17 = scalar_lea.sflag [#allocation8], %s977_s13 }
 0x417   : > { %p1106_p12 = pnand %p1109_p11, %p1544_p13 }
 0x419   : > { %1398 = dma.done.wait (!%p1106_p12), %s978_s17, 128  }
 0x41a   : > { %1400 = vsyncadd (!%p1106_p12), %s978_s17, 4294967168  ;;  %s24_s27 = sadd.s32 1, %s1423_s27   ;;  %s1865_s23 = smov %s1407_s24 }
 0x41b   : > { %p21_p0 = scmp.ge.s32.totalorder %s24_s27, 4   ;;  %s1866_s24 = smov %s1411_s0 }
 0x41c   : > { %s1867_s0 = smov %s1550_s10  ;;  %s1868_s25 = smov %s1419_s26 }
 0x41d   : > { %s1869_s26 = smov %s1871_s30  ;;  %23 = sbr.rel (!%p21_p0) target bundleno = 19 (0x13), region = 89 }
 0x424   :  { %983 = vsyncpa [#allocation8], 1 }
 0x425   :  { %985 = vsyncpa [#allocation8 + $0x1], 1 }

</bundles_post_ra>
